<compile_context>
chip_gen: v6e
topology: v6e:2x2x1
jax: 0.10.0
libtpu: 0.0.40
codegen_flags: <defaults>
</compile_context>

<pallas_src>
import functools
import math

import jax
import jax.numpy as jnp
import numpy as np
from jax.experimental import pallas as pl
from jax.experimental.pallas import tpu as pltpu


def _round_up(v, m):
    return ((v + m - 1) // m) * m


# ----------------------------------------------------------------------------- kernel
def gcn_kernel(x_ref, a_ref, w_ref, b_ref, o_ref, *,
               S, IC, ICP, OCP, T, V, B, inv_scale):
    # x_ref : (1, C, B*T*V)   B batch elements packed along lanes (b-major, then t, v)
    # a_ref : (S, V, V)       A + PA (1e-6)
    # w_ref : (RTOT, C)       stacked rows: [wa_0.. | wb_0.. | bn*wd_0.. | dn*wdn]
    # b_ref : (RTOT, 1)       conv_a/conv_b biases; folded output bias in the down rows
    # o_ref : (1, OCP, B*T*V)
    TV = T * V
    hd = 2 * S * ICP                       # first conv_d row
    dn = hd + S * OCP                      # first down/residual row

    x = x_ref[0]                                                   # (C, B*TV)
    # Every 1x1 conv of the block as one stacked channel-mixing matmul; all biases
    # (incl. the folded conv_d/BN/down output bias) ride along in b_ref.
    fh = jnp.dot(w_ref[...], x,
                 preferred_element_type=jnp.float32) + b_ref[...]  # (RTOT, B*TV)

    outs = []
    for b in range(B):                          # static: elements packed in this step
        fe = fh[:, b * TV:(b + 1) * TV]         # (RTOT, TV), vreg-aligned lane slice

        # down / residual path; the folded output bias is already in these rows.
        y = fe[dn:dn + OCP, :]                  # (OCP, TV)

        # Per-frame V-wide slabs (the only sub-128 lane slices in the kernel).
        slabs = [fe[:, t * V:(t + 1) * V] for t in range(T)]       # T x (RTOT, V)

        # ---- attention: (V, V) logits per subset, no (TV, TV) intermediates -------
        attn_rows = []
        for i in range(S):
            ra = i * ICP                        # conv_a[i] rows
            rb = (S + i) * ICP                  # conv_b[i] rows
            parts = [
                jax.lax.dot_general(
                    slabs[t][ra:ra + IC, :],    # true IC rows only (no zero padding)
                    slabs[t][rb:rb + IC, :],
                    (((0,), (0,)), ((), ())),
                    preferred_element_type=jnp.float32)
                for t in range(T)
            ]
            logits = parts[0]
            for p in parts[1:]:
                logits = logits + p
            logits = logits * inv_scale         # /(inter_c * T)

            # softmax over dim -2 (rows); EUP reciprocal + one Newton step.
            mx = jnp.max(logits, axis=0, keepdims=True)
            e = jnp.exp(logits - mx)
            den = jnp.sum(e, axis=0, keepdims=True)
            r = pl.reciprocal(den, approx=True)
            r = r * (2.0 - den * r)
            attn_rows.append(e * r + a_ref[i])  # (V, V)
        a_stack = jnp.concatenate(attn_rows, axis=0)                # (S*V, V)

        # ---- joint aggregation: all subsets folded into ONE matmul ----------------
        # h_i = (bn_scale * wd_i) @ x rows, relaid to (T*OCP, V) and stacked along
        # the contraction axis so K = S*V.
        h_cats = [
            jnp.concatenate(
                [slabs[t][hd + i * OCP:hd + (i + 1) * OCP, :] for t in range(T)],
                axis=0)                                             # (T*OCP, V)
            for i in range(S)
        ]
        h_big = jnp.concatenate(h_cats, axis=1)                     # (T*OCP, S*V)
        agg = jnp.dot(h_big, a_stack,
                      preferred_element_type=jnp.float32)           # (T*OCP, V)
        y = y + jnp.concatenate(
            [agg[t * OCP:(t + 1) * OCP, :] for t in range(T)], axis=1)  # (OCP, TV)

        outs.append(jnp.maximum(y, 0.0))

    o_ref[0] = outs[0] if B == 1 else jnp.concatenate(outs, axis=1)


# ---------------------------------------------------------------------------- wrapper
def gcn_forward(x, A, wa, ba, wb, bb, wd, bd, wdn, bdn,
                bn_gamma, bn_beta, dn_gamma, dn_beta, *,
                eps=1e-5, batch_block=None):
    """x: (N, C, T, V) float32.  Returns (N, OC, T, V) float32."""
    N, C, T, V = x.shape
    S, IC, _ = wa.shape
    OC = wd.shape[1]
    TV = T * V
    ICP = _round_up(IC, 8)          # pad per-subset row blocks to sublane multiples
    OCP = _round_up(OC, 8)
    f32 = jnp.float32

    if batch_block is None:
        # Keep >= 2 "parallel" grid steps so both v7x TensorCores get work; on
        # single-TC v5e/v6e pass batch_block=N to pack maximally into one step.
        batch_block = N // 2 if (N >= 2 and N % 2 == 0) else 1
    assert N % batch_block == 0, "batch_block must divide N"
    B = batch_block
    NB = N // B

    inv_std = 1.0 / jnp.sqrt(1.0 + eps)          # BN inference: mean=0, var=1
    bns = (bn_gamma * inv_std).astype(f32)       # (OC,)
    dns = (dn_gamma * inv_std).astype(f32)

    def padr(w, rows):                           # pad leading dim with zero rows
        return jnp.pad(w, ((0, rows - w.shape[0]), (0, 0)))

    def padv(v, rows):
        return jnp.pad(v, (0, rows - v.shape[0]))

    wa_p = jnp.concatenate([padr(wa[i], ICP) for i in range(S)], axis=0)
    wb_p = jnp.concatenate([padr(wb[i], ICP) for i in range(S)], axis=0)
    wd_p = jnp.concatenate([padr(wd[i] * bns[:, None], OCP) for i in range(S)], axis=0)
    wdn_p = padr(wdn * dns[:, None], OCP)
    # NOTE: C sits on the lane axis of this resident constant; fine while C is tiny,
    # transpose the stacked layout (or keep C >= 128) once channel counts grow.
    w_all = jnp.concatenate([wa_p, wb_p, wd_p, wdn_p], axis=0).astype(f32)   # (RTOT, C)

    # conv_d biases + main BN beta + down conv bias + down BN beta, folded once and
    # written into the down rows of the single stacked bias column (no extra input).
    yb = bns * jnp.sum(bd, axis=0) + bn_beta + dns * bdn + dn_beta           # (OC,)
    ba_p = jnp.concatenate([padv(ba[i], ICP) for i in range(S)])
    bb_p = jnp.concatenate([padv(bb[i], ICP) for i in range(S)])
    b_all = jnp.concatenate(
        [ba_p, bb_p, jnp.zeros((S * OCP,), f32), padv(yb.astype(f32), OCP)]
    ).astype(f32)[:, None]                                                   # (RTOT, 1)

    a_eff = (A + 1e-6).astype(f32)                                           # A + PA

    # Pack B batch elements along the lane axis: lanes ordered (b, t, v).
    x_pack = (x.reshape(NB, B, C, TV).transpose(0, 2, 1, 3)
               .reshape(NB, C, B * TV).astype(f32))
    RTOT = w_all.shape[0]

    def const(shape):
        nd = len(shape)
        return pl.BlockSpec(shape, lambda n, _nd=nd: (0,) * _nd)

    out = pl.pallas_call(
        functools.partial(gcn_kernel, S=S, IC=IC, ICP=ICP, OCP=OCP,
                          T=T, V=V, B=B, inv_scale=1.0 / float(IC * T)),
        out_shape=jax.ShapeDtypeStruct((NB, OCP, B * TV), f32),
        grid_spec=pltpu.PrefetchScalarGridSpec(
            num_scalar_prefetch=0,
            grid=(NB,),
            in_specs=[
                pl.BlockSpec((1, C, B * TV), lambda n: (n, 0, 0)),
                const((S, V, V)),
                const((RTOT, C)),
                const((RTOT, 1)),
            ],
            out_specs=pl.BlockSpec((1, OCP, B * TV), lambda n: (n, 0, 0)),
        ),
        compiler_params=pltpu.CompilerParams(dimension_semantics=("parallel",)),
    )(x_pack, a_eff, w_all, b_all)

    out = out[:, :OC, :].reshape(NB, OC, B, T, V).transpose(0, 2, 1, 3, 4)
    return out.reshape(N, OC, T, V)


# ------------------------------------------------------------------- pure-JAX reference
def gcn_reference(x, A, wa, ba, wb, bb, wd, bd, wdn, bdn,
                  bn_gamma, bn_beta, dn_gamma, dn_beta, *, eps=1e-5):
    N, C, T, V = x.shape
    S, IC, _ = wa.shape
    a_eff = A + 1e-6
    y = None
    for i in range(S):
        fa = jnp.einsum('oc,nctv->notv', wa[i], x) + ba[i][None, :, None, None]
        fb = jnp.einsum('oc,nctv->notv', wb[i], x) + bb[i][None, :, None, None]
        A1 = fa.transpose(0, 3, 1, 2).reshape(N, V, IC * T)
        A2 = fb.reshape(N, IC * T, V)
        logits = jnp.matmul(A1, A2) / (IC * T)
        attn = jax.nn.softmax(logits, axis=-2) + a_eff[i]
        agg = jnp.matmul(x.reshape(N, C * T, V), attn).reshape(N, C, T, V)
        z = jnp.einsum('oc,nctv->notv', wd[i], agg) + bd[i][None, :, None, None]
        y = z if y is None else y + z
    inv_std = 1.0 / jnp.sqrt(1.0 + eps)
    y = y * (bn_gamma * inv_std)[None, :, None, None] + bn_beta[None, :, None, None]
    d = jnp.einsum('oc,nctv->notv', wdn, x) + bdn[None, :, None, None]
    d = d * (dn_gamma * inv_std)[None, :, None, None] + dn_beta[None, :, None, None]
    return jax.nn.relu(y + d)


# ------------------------------------------------------------------------------- main
if __name__ == "__main__":
    N, C, T, V = 2, 4, 8, 16          # batch, in_channels, frames, joints
    OC = 16                           # out_channels
    COFF = 4                          # coff_embedding
    S = 3                             # num_subset
    IC = OC // COFF                   # inter_channels

    key = jax.random.PRNGKey(0)
    (k_x, k_a, k_wa, k_wb, k_wd, k_dn,
     k_ba, k_bb, k_bd, k_bdn, k_bn, k_bnb) = jax.random.split(key, 12)

    x = jax.random.normal(k_x, (N, C, T, V), dtype=jnp.float32)
    # deterministic adjacency stack A: (num_subset, V, V)
    A = (jax.random.uniform(k_a, (S, V, V)) < 0.3).astype(jnp.float32)
    A = A + jnp.eye(V, dtype=jnp.float32)[None]

    # conv_a / conv_b : kaiming_normal fan_out -> std = sqrt(2 / out_channels)
    wa = jax.random.normal(k_wa, (S, IC, C), jnp.float32) * math.sqrt(2.0 / IC)
    wb = jax.random.normal(k_wb, (S, IC, C), jnp.float32) * math.sqrt(2.0 / IC)
    # conv_d : init_conv_branch -> std = sqrt(2 / (OC * C * 1 * num_subset))
    wd = jax.random.normal(k_wd, (S, OC, C), jnp.float32) * math.sqrt(2.0 / (OC * C * S))
    # down path conv (in_channels != out_channels)
    wdn = jax.random.normal(k_dn, (OC, C), jnp.float32) * math.sqrt(2.0 / OC)

    # --- test 1: module-faithful init (conv biases 0, main BN gamma = 1e-6);
    #             default packing -> 2 "parallel" grid steps (v7x-friendly) ---------
    ba = jnp.zeros((S, IC), jnp.float32)
    bb = jnp.zeros((S, IC), jnp.float32)
    bd = jnp.zeros((S, OC), jnp.float32)
    bdn = jnp.zeros((OC,), jnp.float32)
    bn_gamma = jnp.full((OC,), 1e-6, jnp.float32)
    bn_beta = jnp.zeros((OC,), jnp.float32)
    dn_gamma = jnp.ones((OC,), jnp.float32)
    dn_beta = jnp.zeros((OC,), jnp.float32)

    args1 = (x, A, wa, ba, wb, bb, wd, bd, wdn, bdn,
             bn_gamma, bn_beta, dn_gamma, dn_beta)
    out1 = jax.block_until_ready(gcn_forward(*args1))
    ref1 = gcn_reference(*args1)
    np.testing.assert_allclose(np.asarray(out1), np.asarray(ref1), rtol=2e-4, atol=5e-5)

    # --- test 2: non-trivial biases / BN params (so the attention + bias-folding
    #             paths are visible) AND fully packed batch (batch_block=N -> one
    #             grid step, 2*T*V = 256 lane-wide stores; the v5e/v6e config) ------
    ba2 = 0.1 * jax.random.normal(k_ba, (S, IC), jnp.float32)
    bb2 = 0.1 * jax.random.normal(k_bb, (S, IC), jnp.float32)
    bd2 = 0.1 * jax.random.normal(k_bd, (S, OC), jnp.float32)
    bdn2 = 0.1 * jax.random.normal(k_bdn, (OC,), jnp.float32)
    bn_gamma2 = 1.0 + 0.1 * jax.random.normal(k_bn, (OC,), jnp.float32)
    bn_beta2 = 0.1 * jax.random.normal(k_bnb, (OC,), jnp.float32)
    dn_gamma2 = jnp.ones((OC,), jnp.float32)
    dn_beta2 = jnp.zeros((OC,), jnp.float32)

    args2 = (x, A, wa, ba2, wb, bb2, wd, bd2, wdn, bdn2,
             bn_gamma2, bn_beta2, dn_gamma2, dn_beta2)
    out2 = jax.block_until_ready(gcn_forward(*args2, batch_block=N))
    ref2 = gcn_reference(*args2)
    np.testing.assert_allclose(np.asarray(out2), np.asarray(ref2), rtol=2e-4, atol=5e-5)

    print("KERNEL_OK")
</pallas_src>

<mosaic_0001>
module attributes {stable_mosaic.version = 11 : i64} {
  func.func @gcn_kernel(%arg0: i32, %arg1: memref<1x4x128xf32, #tpu.memory_space<vmem>>, %arg2: memref<3x16x16xf32, #tpu.memory_space<vmem>>, %arg3: memref<112x4xf32, #tpu.memory_space<vmem>>, %arg4: memref<112x1xf32, #tpu.memory_space<vmem>>, %arg5: memref<1x16x128xf32, #tpu.memory_space<vmem>>) attributes {dimension_semantics = [#tpu.dimension_semantics<parallel>], iteration_bounds = array<i64: 2>, scalar_prefetch = 0 : i64, scratch_operands = 0 : i64, tpu.core_type = #tpu.core_type<tc>, window_params = [{transform_indices = @transform_0, window_bounds = array<i64: 1, 4, 128>}, {pipeline_mode = #tpu.pipeline_mode<synchronous>, transform_indices = @transform_1, window_bounds = array<i64: 3, 16, 16>}, {pipeline_mode = #tpu.pipeline_mode<synchronous>, transform_indices = @transform_2, window_bounds = array<i64: 112, 4>}, {pipeline_mode = #tpu.pipeline_mode<synchronous>, transform_indices = @transform_3, window_bounds = array<i64: 112, 1>}, {transform_indices = @transform_4, window_bounds = array<i64: 1, 16, 128>}]} {
    %c0 = arith.constant 0 : index
    %c0_0 = arith.constant 0 : index
    %c0_1 = arith.constant 0 : index
    %0 = vector.load %arg1[%c0, %c0_0, %c0_1] : memref<1x4x128xf32, #tpu.memory_space<vmem>>, vector<1x4x128xf32>
    %1 = vector.shape_cast %0 : vector<1x4x128xf32> to vector<4x128xf32>
    %c0_2 = arith.constant 0 : index
    %c0_3 = arith.constant 0 : index
    %2 = vector.load %arg3[%c0_2, %c0_3] : memref<112x4xf32, #tpu.memory_space<vmem>>, vector<112x4xf32>
    %cst = arith.constant dense<0.000000e+00> : vector<112x128xf32>
    %3 = tpu.matmul %2, %1, %cst {dimension_numbers = #tpu.dot_dimension_numbers<[1], [0], [0], [1], [0, 0, 1, 1], [], []>} : vector<112x4xf32>, vector<4x128xf32>, vector<112x128xf32> -> vector<112x128xf32>
    %c0_4 = arith.constant 0 : index
    %c0_5 = arith.constant 0 : index
    %4 = vector.load %arg4[%c0_4, %c0_5] : memref<112x1xf32, #tpu.memory_space<vmem>>, vector<112x1xf32>
    %5 = vector.broadcast %4 : vector<112x1xf32> to vector<112x128xf32>
    %6 = arith.addf %3, %5 : vector<112x128xf32>
    %7 = vector.extract_strided_slice %6 {offsets = [96, 0], sizes = [16, 128], strides = [1, 1]} : vector<112x128xf32> to vector<16x128xf32>
    %8 = vector.extract_strided_slice %6 {offsets = [0, 0], sizes = [112, 16], strides = [1, 1]} : vector<112x128xf32> to vector<112x16xf32>
    %9 = vector.extract_strided_slice %6 {offsets = [0, 16], sizes = [112, 16], strides = [1, 1]} : vector<112x128xf32> to vector<112x16xf32>
    %10 = vector.extract_strided_slice %6 {offsets = [0, 32], sizes = [112, 16], strides = [1, 1]} : vector<112x128xf32> to vector<112x16xf32>
    %11 = vector.extract_strided_slice %6 {offsets = [0, 48], sizes = [112, 16], strides = [1, 1]} : vector<112x128xf32> to vector<112x16xf32>
    %12 = vector.extract_strided_slice %6 {offsets = [0, 64], sizes = [112, 16], strides = [1, 1]} : vector<112x128xf32> to vector<112x16xf32>
    %13 = vector.extract_strided_slice %6 {offsets = [0, 80], sizes = [112, 16], strides = [1, 1]} : vector<112x128xf32> to vector<112x16xf32>
    %14 = vector.extract_strided_slice %6 {offsets = [0, 96], sizes = [112, 16], strides = [1, 1]} : vector<112x128xf32> to vector<112x16xf32>
    %15 = vector.extract_strided_slice %6 {offsets = [0, 112], sizes = [112, 16], strides = [1, 1]} : vector<112x128xf32> to vector<112x16xf32>
    %16 = vector.extract_strided_slice %8 {offsets = [0, 0], sizes = [4, 16], strides = [1, 1]} : vector<112x16xf32> to vector<4x16xf32>
    %17 = vector.extract_strided_slice %8 {offsets = [24, 0], sizes = [4, 16], strides = [1, 1]} : vector<112x16xf32> to vector<4x16xf32>
    %cst_6 = arith.constant dense<0.000000e+00> : vector<16x16xf32>
    %18 = tpu.matmul %16, %17, %cst_6 {dimension_numbers = #tpu.dot_dimension_numbers<[0], [0], [1], [1], [0, 1, 1, 1], [], []>} : vector<4x16xf32>, vector<4x16xf32>, vector<16x16xf32> -> vector<16x16xf32>
    %19 = vector.extract_strided_slice %9 {offsets = [0, 0], sizes = [4, 16], strides = [1, 1]} : vector<112x16xf32> to vector<4x16xf32>
    %20 = vector.extract_strided_slice %9 {offsets = [24, 0], sizes = [4, 16], strides = [1, 1]} : vector<112x16xf32> to vector<4x16xf32>
    %cst_7 = arith.constant dense<0.000000e+00> : vector<16x16xf32>
    %21 = tpu.matmul %19, %20, %cst_7 {dimension_numbers = #tpu.dot_dimension_numbers<[0], [0], [1], [1], [0, 1, 1, 1], [], []>} : vector<4x16xf32>, vector<4x16xf32>, vector<16x16xf32> -> vector<16x16xf32>
    %22 = vector.extract_strided_slice %10 {offsets = [0, 0], sizes = [4, 16], strides = [1, 1]} : vector<112x16xf32> to vector<4x16xf32>
    %23 = vector.extract_strided_slice %10 {offsets = [24, 0], sizes = [4, 16], strides = [1, 1]} : vector<112x16xf32> to vector<4x16xf32>
    %cst_8 = arith.constant dense<0.000000e+00> : vector<16x16xf32>
    %24 = tpu.matmul %22, %23, %cst_8 {dimension_numbers = #tpu.dot_dimension_numbers<[0], [0], [1], [1], [0, 1, 1, 1], [], []>} : vector<4x16xf32>, vector<4x16xf32>, vector<16x16xf32> -> vector<16x16xf32>
    %25 = vector.extract_strided_slice %11 {offsets = [0, 0], sizes = [4, 16], strides = [1, 1]} : vector<112x16xf32> to vector<4x16xf32>
    %26 = vector.extract_strided_slice %11 {offsets = [24, 0], sizes = [4, 16], strides = [1, 1]} : vector<112x16xf32> to vector<4x16xf32>
    %cst_9 = arith.constant dense<0.000000e+00> : vector<16x16xf32>
    %27 = tpu.matmul %25, %26, %cst_9 {dimension_numbers = #tpu.dot_dimension_numbers<[0], [0], [1], [1], [0, 1, 1, 1], [], []>} : vector<4x16xf32>, vector<4x16xf32>, vector<16x16xf32> -> vector<16x16xf32>
    %28 = vector.extract_strided_slice %12 {offsets = [0, 0], sizes = [4, 16], strides = [1, 1]} : vector<112x16xf32> to vector<4x16xf32>
    %29 = vector.extract_strided_slice %12 {offsets = [24, 0], sizes = [4, 16], strides = [1, 1]} : vector<112x16xf32> to vector<4x16xf32>
    %cst_10 = arith.constant dense<0.000000e+00> : vector<16x16xf32>
    %30 = tpu.matmul %28, %29, %cst_10 {dimension_numbers = #tpu.dot_dimension_numbers<[0], [0], [1], [1], [0, 1, 1, 1], [], []>} : vector<4x16xf32>, vector<4x16xf32>, vector<16x16xf32> -> vector<16x16xf32>
    %31 = vector.extract_strided_slice %13 {offsets = [0, 0], sizes = [4, 16], strides = [1, 1]} : vector<112x16xf32> to vector<4x16xf32>
    %32 = vector.extract_strided_slice %13 {offsets = [24, 0], sizes = [4, 16], strides = [1, 1]} : vector<112x16xf32> to vector<4x16xf32>
    %cst_11 = arith.constant dense<0.000000e+00> : vector<16x16xf32>
    %33 = tpu.matmul %31, %32, %cst_11 {dimension_numbers = #tpu.dot_dimension_numbers<[0], [0], [1], [1], [0, 1, 1, 1], [], []>} : vector<4x16xf32>, vector<4x16xf32>, vector<16x16xf32> -> vector<16x16xf32>
    %34 = vector.extract_strided_slice %14 {offsets = [0, 0], sizes = [4, 16], strides = [1, 1]} : vector<112x16xf32> to vector<4x16xf32>
    %35 = vector.extract_strided_slice %14 {offsets = [24, 0], sizes = [4, 16], strides = [1, 1]} : vector<112x16xf32> to vector<4x16xf32>
    %cst_12 = arith.constant dense<0.000000e+00> : vector<16x16xf32>
    %36 = tpu.matmul %34, %35, %cst_12 {dimension_numbers = #tpu.dot_dimension_numbers<[0], [0], [1], [1], [0, 1, 1, 1], [], []>} : vector<4x16xf32>, vector<4x16xf32>, vector<16x16xf32> -> vector<16x16xf32>
    %37 = vector.extract_strided_slice %15 {offsets = [0, 0], sizes = [4, 16], strides = [1, 1]} : vector<112x16xf32> to vector<4x16xf32>
    %38 = vector.extract_strided_slice %15 {offsets = [24, 0], sizes = [4, 16], strides = [1, 1]} : vector<112x16xf32> to vector<4x16xf32>
    %cst_13 = arith.constant dense<0.000000e+00> : vector<16x16xf32>
    %39 = tpu.matmul %37, %38, %cst_13 {dimension_numbers = #tpu.dot_dimension_numbers<[0], [0], [1], [1], [0, 1, 1, 1], [], []>} : vector<4x16xf32>, vector<4x16xf32>, vector<16x16xf32> -> vector<16x16xf32>
    %40 = arith.addf %18, %21 : vector<16x16xf32>
    %41 = arith.addf %40, %24 : vector<16x16xf32>
    %42 = arith.addf %41, %27 : vector<16x16xf32>
    %43 = arith.addf %42, %30 : vector<16x16xf32>
    %44 = arith.addf %43, %33 : vector<16x16xf32>
    %45 = arith.addf %44, %36 : vector<16x16xf32>
    %46 = arith.addf %45, %39 : vector<16x16xf32>
    %cst_14 = arith.constant 3.125000e-02 : f32
    %47 = vector.broadcast %cst_14 : f32 to vector<16x16xf32>
    %48 = arith.mulf %46, %47 : vector<16x16xf32>
    %cst_15 = arith.constant dense<0xFF800000> : vector<16xf32>
    %49 = vector.multi_reduction <maximumf>, %48, %cst_15 [0] : vector<16x16xf32> to vector<16xf32>
    %50 = vector.shape_cast %49 : vector<16xf32> to vector<1x16xf32>
    %51 = vector.broadcast %50 : vector<1x16xf32> to vector<16x16xf32>
    %52 = arith.subf %48, %51 : vector<16x16xf32>
    %53 = math.exp %52 : vector<16x16xf32>
    %cst_16 = arith.constant dense<0.000000e+00> : vector<16xf32>
    %54 = vector.multi_reduction <add>, %53, %cst_16 [0] : vector<16x16xf32> to vector<16xf32>
    %55 = vector.shape_cast %54 : vector<16xf32> to vector<1x16xf32>
    %56 = tpu.reciprocal %55 {approx = true} : vector<1x16xf32> -> vector<1x16xf32>
    %57 = arith.mulf %55, %56 : vector<1x16xf32>
    %cst_17 = arith.constant 2.000000e+00 : f32
    %58 = vector.broadcast %cst_17 : f32 to vector<1x16xf32>
    %59 = arith.subf %58, %57 : vector<1x16xf32>
    %60 = arith.mulf %56, %59 : vector<1x16xf32>
    %61 = vector.broadcast %60 : vector<1x16xf32> to vector<16x16xf32>
    %62 = arith.mulf %53, %61 : vector<16x16xf32>
    %c0_18 = arith.constant 0 : index
    %c0_19 = arith.constant 0 : index
    %c0_20 = arith.constant 0 : index
    %63 = vector.load %arg2[%c0_18, %c0_19, %c0_20] : memref<3x16x16xf32, #tpu.memory_space<vmem>>, vector<1x16x16xf32>
    %64 = vector.shape_cast %63 : vector<1x16x16xf32> to vector<16x16xf32>
    %65 = arith.addf %62, %64 : vector<16x16xf32>
    %66 = vector.extract_strided_slice %8 {offsets = [8, 0], sizes = [4, 16], strides = [1, 1]} : vector<112x16xf32> to vector<4x16xf32>
    %67 = vector.extract_strided_slice %8 {offsets = [32, 0], sizes = [4, 16], strides = [1, 1]} : vector<112x16xf32> to vector<4x16xf32>
    %cst_21 = arith.constant dense<0.000000e+00> : vector<16x16xf32>
    %68 = tpu.matmul %66, %67, %cst_21 {dimension_numbers = #tpu.dot_dimension_numbers<[0], [0], [1], [1], [0, 1, 1, 1], [], []>} : vector<4x16xf32>, vector<4x16xf32>, vector<16x16xf32> -> vector<16x16xf32>
    %69 = vector.extract_strided_slice %9 {offsets = [8, 0], sizes = [4, 16], strides = [1, 1]} : vector<112x16xf32> to vector<4x16xf32>
    %70 = vector.extract_strided_slice %9 {offsets = [32, 0], sizes = [4, 16], strides = [1, 1]} : vector<112x16xf32> to vector<4x16xf32>
    %cst_22 = arith.constant dense<0.000000e+00> : vector<16x16xf32>
    %71 = tpu.matmul %69, %70, %cst_22 {dimension_numbers = #tpu.dot_dimension_numbers<[0], [0], [1], [1], [0, 1, 1, 1], [], []>} : vector<4x16xf32>, vector<4x16xf32>, vector<16x16xf32> -> vector<16x16xf32>
    %72 = vector.extract_strided_slice %10 {offsets = [8, 0], sizes = [4, 16], strides = [1, 1]} : vector<112x16xf32> to vector<4x16xf32>
    %73 = vector.extract_strided_slice %10 {offsets = [32, 0], sizes = [4, 16], strides = [1, 1]} : vector<112x16xf32> to vector<4x16xf32>
    %cst_23 = arith.constant dense<0.000000e+00> : vector<16x16xf32>
    %74 = tpu.matmul %72, %73, %cst_23 {dimension_numbers = #tpu.dot_dimension_numbers<[0], [0], [1], [1], [0, 1, 1, 1], [], []>} : vector<4x16xf32>, vector<4x16xf32>, vector<16x16xf32> -> vector<16x16xf32>
    %75 = vector.extract_strided_slice %11 {offsets = [8, 0], sizes = [4, 16], strides = [1, 1]} : vector<112x16xf32> to vector<4x16xf32>
    %76 = vector.extract_strided_slice %11 {offsets = [32, 0], sizes = [4, 16], strides = [1, 1]} : vector<112x16xf32> to vector<4x16xf32>
    %cst_24 = arith.constant dense<0.000000e+00> : vector<16x16xf32>
    %77 = tpu.matmul %75, %76, %cst_24 {dimension_numbers = #tpu.dot_dimension_numbers<[0], [0], [1], [1], [0, 1, 1, 1], [], []>} : vector<4x16xf32>, vector<4x16xf32>, vector<16x16xf32> -> vector<16x16xf32>
    %78 = vector.extract_strided_slice %12 {offsets = [8, 0], sizes = [4, 16], strides = [1, 1]} : vector<112x16xf32> to vector<4x16xf32>
    %79 = vector.extract_strided_slice %12 {offsets = [32, 0], sizes = [4, 16], strides = [1, 1]} : vector<112x16xf32> to vector<4x16xf32>
    %cst_25 = arith.constant dense<0.000000e+00> : vector<16x16xf32>
    %80 = tpu.matmul %78, %79, %cst_25 {dimension_numbers = #tpu.dot_dimension_numbers<[0], [0], [1], [1], [0, 1, 1, 1], [], []>} : vector<4x16xf32>, vector<4x16xf32>, vector<16x16xf32> -> vector<16x16xf32>
    %81 = vector.extract_strided_slice %13 {offsets = [8, 0], sizes = [4, 16], strides = [1, 1]} : vector<112x16xf32> to vector<4x16xf32>
    %82 = vector.extract_strided_slice %13 {offsets = [32, 0], sizes = [4, 16], strides = [1, 1]} : vector<112x16xf32> to vector<4x16xf32>
    %cst_26 = arith.constant dense<0.000000e+00> : vector<16x16xf32>
    %83 = tpu.matmul %81, %82, %cst_26 {dimension_numbers = #tpu.dot_dimension_numbers<[0], [0], [1], [1], [0, 1, 1, 1], [], []>} : vector<4x16xf32>, vector<4x16xf32>, vector<16x16xf32> -> vector<16x16xf32>
    %84 = vector.extract_strided_slice %14 {offsets = [8, 0], sizes = [4, 16], strides = [1, 1]} : vector<112x16xf32> to vector<4x16xf32>
    %85 = vector.extract_strided_slice %14 {offsets = [32, 0], sizes = [4, 16], strides = [1, 1]} : vector<112x16xf32> to vector<4x16xf32>
    %cst_27 = arith.constant dense<0.000000e+00> : vector<16x16xf32>
    %86 = tpu.matmul %84, %85, %cst_27 {dimension_numbers = #tpu.dot_dimension_numbers<[0], [0], [1], [1], [0, 1, 1, 1], [], []>} : vector<4x16xf32>, vector<4x16xf32>, vector<16x16xf32> -> vector<16x16xf32>
    %87 = vector.extract_strided_slice %15 {offsets = [8, 0], sizes = [4, 16], strides = [1, 1]} : vector<112x16xf32> to vector<4x16xf32>
    %88 = vector.extract_strided_slice %15 {offsets = [32, 0], sizes = [4, 16], strides = [1, 1]} : vector<112x16xf32> to vector<4x16xf32>
    %cst_28 = arith.constant dense<0.000000e+00> : vector<16x16xf32>
    %89 = tpu.matmul %87, %88, %cst_28 {dimension_numbers = #tpu.dot_dimension_numbers<[0], [0], [1], [1], [0, 1, 1, 1], [], []>} : vector<4x16xf32>, vector<4x16xf32>, vector<16x16xf32> -> vector<16x16xf32>
    %90 = arith.addf %68, %71 : vector<16x16xf32>
    %91 = arith.addf %90, %74 : vector<16x16xf32>
    %92 = arith.addf %91, %77 : vector<16x16xf32>
    %93 = arith.addf %92, %80 : vector<16x16xf32>
    %94 = arith.addf %93, %83 : vector<16x16xf32>
    %95 = arith.addf %94, %86 : vector<16x16xf32>
    %96 = arith.addf %95, %89 : vector<16x16xf32>
    %cst_29 = arith.constant 3.125000e-02 : f32
    %97 = vector.broadcast %cst_29 : f32 to vector<16x16xf32>
    %98 = arith.mulf %96, %97 : vector<16x16xf32>
    %cst_30 = arith.constant dense<0xFF800000> : vector<16xf32>
    %99 = vector.multi_reduction <maximumf>, %98, %cst_30 [0] : vector<16x16xf32> to vector<16xf32>
    %100 = vector.shape_cast %99 : vector<16xf32> to vector<1x16xf32>
    %101 = vector.broadcast %100 : vector<1x16xf32> to vector<16x16xf32>
    %102 = arith.subf %98, %101 : vector<16x16xf32>
    %103 = math.exp %102 : vector<16x16xf32>
    %cst_31 = arith.constant dense<0.000000e+00> : vector<16xf32>
    %104 = vector.multi_reduction <add>, %103, %cst_31 [0] : vector<16x16xf32> to vector<16xf32>
    %105 = vector.shape_cast %104 : vector<16xf32> to vector<1x16xf32>
    %106 = tpu.reciprocal %105 {approx = true} : vector<1x16xf32> -> vector<1x16xf32>
    %107 = arith.mulf %105, %106 : vector<1x16xf32>
    %cst_32 = arith.constant 2.000000e+00 : f32
    %108 = vector.broadcast %cst_32 : f32 to vector<1x16xf32>
    %109 = arith.subf %108, %107 : vector<1x16xf32>
    %110 = arith.mulf %106, %109 : vector<1x16xf32>
    %111 = vector.broadcast %110 : vector<1x16xf32> to vector<16x16xf32>
    %112 = arith.mulf %103, %111 : vector<16x16xf32>
    %c1 = arith.constant 1 : index
    %c0_33 = arith.constant 0 : index
    %c0_34 = arith.constant 0 : index
    %113 = vector.load %arg2[%c1, %c0_33, %c0_34] : memref<3x16x16xf32, #tpu.memory_space<vmem>>, vector<1x16x16xf32>
    %114 = vector.shape_cast %113 : vector<1x16x16xf32> to vector<16x16xf32>
    %115 = arith.addf %112, %114 : vector<16x16xf32>
    %116 = vector.extract_strided_slice %8 {offsets = [16, 0], sizes = [4, 16], strides = [1, 1]} : vector<112x16xf32> to vector<4x16xf32>
    %117 = vector.extract_strided_slice %8 {offsets = [40, 0], sizes = [4, 16], strides = [1, 1]} : vector<112x16xf32> to vector<4x16xf32>
    %cst_35 = arith.constant dense<0.000000e+00> : vector<16x16xf32>
    %118 = tpu.matmul %116, %117, %cst_35 {dimension_numbers = #tpu.dot_dimension_numbers<[0], [0], [1], [1], [0, 1, 1, 1], [], []>} : vector<4x16xf32>, vector<4x16xf32>, vector<16x16xf32> -> vector<16x16xf32>
    %119 = vector.extract_strided_slice %9 {offsets = [16, 0], sizes = [4, 16], strides = [1, 1]} : vector<112x16xf32> to vector<4x16xf32>
    %120 = vector.extract_strided_slice %9 {offsets = [40, 0], sizes = [4, 16], strides = [1, 1]} : vector<112x16xf32> to vector<4x16xf32>
    %cst_36 = arith.constant dense<0.000000e+00> : vector<16x16xf32>
    %121 = tpu.matmul %119, %120, %cst_36 {dimension_numbers = #tpu.dot_dimension_numbers<[0], [0], [1], [1], [0, 1, 1, 1], [], []>} : vector<4x16xf32>, vector<4x16xf32>, vector<16x16xf32> -> vector<16x16xf32>
    %122 = vector.extract_strided_slice %10 {offsets = [16, 0], sizes = [4, 16], strides = [1, 1]} : vector<112x16xf32> to vector<4x16xf32>
    %123 = vector.extract_strided_slice %10 {offsets = [40, 0], sizes = [4, 16], strides = [1, 1]} : vector<112x16xf32> to vector<4x16xf32>
    %cst_37 = arith.constant dense<0.000000e+00> : vector<16x16xf32>
    %124 = tpu.matmul %122, %123, %cst_37 {dimension_numbers = #tpu.dot_dimension_numbers<[0], [0], [1], [1], [0, 1, 1, 1], [], []>} : vector<4x16xf32>, vector<4x16xf32>, vector<16x16xf32> -> vector<16x16xf32>
    %125 = vector.extract_strided_slice %11 {offsets = [16, 0], sizes = [4, 16], strides = [1, 1]} : vector<112x16xf32> to vector<4x16xf32>
    %126 = vector.extract_strided_slice %11 {offsets = [40, 0], sizes = [4, 16], strides = [1, 1]} : vector<112x16xf32> to vector<4x16xf32>
    %cst_38 = arith.constant dense<0.000000e+00> : vector<16x16xf32>
    %127 = tpu.matmul %125, %126, %cst_38 {dimension_numbers = #tpu.dot_dimension_numbers<[0], [0], [1], [1], [0, 1, 1, 1], [], []>} : vector<4x16xf32>, vector<4x16xf32>, vector<16x16xf32> -> vector<16x16xf32>
    %128 = vector.extract_strided_slice %12 {offsets = [16, 0], sizes = [4, 16], strides = [1, 1]} : vector<112x16xf32> to vector<4x16xf32>
    %129 = vector.extract_strided_slice %12 {offsets = [40, 0], sizes = [4, 16], strides = [1, 1]} : vector<112x16xf32> to vector<4x16xf32>
    %cst_39 = arith.constant dense<0.000000e+00> : vector<16x16xf32>
    %130 = tpu.matmul %128, %129, %cst_39 {dimension_numbers = #tpu.dot_dimension_numbers<[0], [0], [1], [1], [0, 1, 1, 1], [], []>} : vector<4x16xf32>, vector<4x16xf32>, vector<16x16xf32> -> vector<16x16xf32>
    %131 = vector.extract_strided_slice %13 {offsets = [16, 0], sizes = [4, 16], strides = [1, 1]} : vector<112x16xf32> to vector<4x16xf32>
    %132 = vector.extract_strided_slice %13 {offsets = [40, 0], sizes = [4, 16], strides = [1, 1]} : vector<112x16xf32> to vector<4x16xf32>
    %cst_40 = arith.constant dense<0.000000e+00> : vector<16x16xf32>
    %133 = tpu.matmul %131, %132, %cst_40 {dimension_numbers = #tpu.dot_dimension_numbers<[0], [0], [1], [1], [0, 1, 1, 1], [], []>} : vector<4x16xf32>, vector<4x16xf32>, vector<16x16xf32> -> vector<16x16xf32>
    %134 = vector.extract_strided_slice %14 {offsets = [16, 0], sizes = [4, 16], strides = [1, 1]} : vector<112x16xf32> to vector<4x16xf32>
    %135 = vector.extract_strided_slice %14 {offsets = [40, 0], sizes = [4, 16], strides = [1, 1]} : vector<112x16xf32> to vector<4x16xf32>
    %cst_41 = arith.constant dense<0.000000e+00> : vector<16x16xf32>
    %136 = tpu.matmul %134, %135, %cst_41 {dimension_numbers = #tpu.dot_dimension_numbers<[0], [0], [1], [1], [0, 1, 1, 1], [], []>} : vector<4x16xf32>, vector<4x16xf32>, vector<16x16xf32> -> vector<16x16xf32>
    %137 = vector.extract_strided_slice %15 {offsets = [16, 0], sizes = [4, 16], strides = [1, 1]} : vector<112x16xf32> to vector<4x16xf32>
    %138 = vector.extract_strided_slice %15 {offsets = [40, 0], sizes = [4, 16], strides = [1, 1]} : vector<112x16xf32> to vector<4x16xf32>
    %cst_42 = arith.constant dense<0.000000e+00> : vector<16x16xf32>
    %139 = tpu.matmul %137, %138, %cst_42 {dimension_numbers = #tpu.dot_dimension_numbers<[0], [0], [1], [1], [0, 1, 1, 1], [], []>} : vector<4x16xf32>, vector<4x16xf32>, vector<16x16xf32> -> vector<16x16xf32>
    %140 = arith.addf %118, %121 : vector<16x16xf32>
    %141 = arith.addf %140, %124 : vector<16x16xf32>
    %142 = arith.addf %141, %127 : vector<16x16xf32>
    %143 = arith.addf %142, %130 : vector<16x16xf32>
    %144 = arith.addf %143, %133 : vector<16x16xf32>
    %145 = arith.addf %144, %136 : vector<16x16xf32>
    %146 = arith.addf %145, %139 : vector<16x16xf32>
    %cst_43 = arith.constant 3.125000e-02 : f32
    %147 = vector.broadcast %cst_43 : f32 to vector<16x16xf32>
    %148 = arith.mulf %146, %147 : vector<16x16xf32>
    %cst_44 = arith.constant dense<0xFF800000> : vector<16xf32>
    %149 = vector.multi_reduction <maximumf>, %148, %cst_44 [0] : vector<16x16xf32> to vector<16xf32>
    %150 = vector.shape_cast %149 : vector<16xf32> to vector<1x16xf32>
    %151 = vector.broadcast %150 : vector<1x16xf32> to vector<16x16xf32>
    %152 = arith.subf %148, %151 : vector<16x16xf32>
    %153 = math.exp %152 : vector<16x16xf32>
    %cst_45 = arith.constant dense<0.000000e+00> : vector<16xf32>
    %154 = vector.multi_reduction <add>, %153, %cst_45 [0] : vector<16x16xf32> to vector<16xf32>
    %155 = vector.shape_cast %154 : vector<16xf32> to vector<1x16xf32>
    %156 = tpu.reciprocal %155 {approx = true} : vector<1x16xf32> -> vector<1x16xf32>
    %157 = arith.mulf %155, %156 : vector<1x16xf32>
    %cst_46 = arith.constant 2.000000e+00 : f32
    %158 = vector.broadcast %cst_46 : f32 to vector<1x16xf32>
    %159 = arith.subf %158, %157 : vector<1x16xf32>
    %160 = arith.mulf %156, %159 : vector<1x16xf32>
    %161 = vector.broadcast %160 : vector<1x16xf32> to vector<16x16xf32>
    %162 = arith.mulf %153, %161 : vector<16x16xf32>
    %c2 = arith.constant 2 : index
    %c0_47 = arith.constant 0 : index
    %c0_48 = arith.constant 0 : index
    %163 = vector.load %arg2[%c2, %c0_47, %c0_48] : memref<3x16x16xf32, #tpu.memory_space<vmem>>, vector<1x16x16xf32>
    %164 = vector.shape_cast %163 : vector<1x16x16xf32> to vector<16x16xf32>
    %165 = arith.addf %162, %164 : vector<16x16xf32>
    %166 = tpu.concatenate %65, %115, %165 in 0 : vector<16x16xf32>, vector<16x16xf32>, vector<16x16xf32> -> vector<48x16xf32>
    %167 = vector.extract_strided_slice %8 {offsets = [48, 0], sizes = [16, 16], strides = [1, 1]} : vector<112x16xf32> to vector<16x16xf32>
    %168 = vector.extract_strided_slice %9 {offsets = [48, 0], sizes = [16, 16], strides = [1, 1]} : vector<112x16xf32> to vector<16x16xf32>
    %169 = vector.extract_strided_slice %10 {offsets = [48, 0], sizes = [16, 16], strides = [1, 1]} : vector<112x16xf32> to vector<16x16xf32>
    %170 = vector.extract_strided_slice %11 {offsets = [48, 0], sizes = [16, 16], strides = [1, 1]} : vector<112x16xf32> to vector<16x16xf32>
    %171 = vector.extract_strided_slice %12 {offsets = [48, 0], sizes = [16, 16], strides = [1, 1]} : vector<112x16xf32> to vector<16x16xf32>
    %172 = vector.extract_strided_slice %13 {offsets = [48, 0], sizes = [16, 16], strides = [1, 1]} : vector<112x16xf32> to vector<16x16xf32>
    %173 = vector.extract_strided_slice %14 {offsets = [48, 0], sizes = [16, 16], strides = [1, 1]} : vector<112x16xf32> to vector<16x16xf32>
    %174 = vector.extract_strided_slice %15 {offsets = [48, 0], sizes = [16, 16], strides = [1, 1]} : vector<112x16xf32> to vector<16x16xf32>
    %175 = tpu.concatenate %167, %168, %169, %170, %171, %172, %173, %174 in 0 : vector<16x16xf32>, vector<16x16xf32>, vector<16x16xf32>, vector<16x16xf32>, vector<16x16xf32>, vector<16x16xf32>, vector<16x16xf32>, vector<16x16xf32> -> vector<128x16xf32>
    %176 = vector.extract_strided_slice %8 {offsets = [64, 0], sizes = [16, 16], strides = [1, 1]} : vector<112x16xf32> to vector<16x16xf32>
    %177 = vector.extract_strided_slice %9 {offsets = [64, 0], sizes = [16, 16], strides = [1, 1]} : vector<112x16xf32> to vector<16x16xf32>
    %178 = vector.extract_strided_slice %10 {offsets = [64, 0], sizes = [16, 16], strides = [1, 1]} : vector<112x16xf32> to vector<16x16xf32>
    %179 = vector.extract_strided_slice %11 {offsets = [64, 0], sizes = [16, 16], strides = [1, 1]} : vector<112x16xf32> to vector<16x16xf32>
    %180 = vector.extract_strided_slice %12 {offsets = [64, 0], sizes = [16, 16], strides = [1, 1]} : vector<112x16xf32> to vector<16x16xf32>
    %181 = vector.extract_strided_slice %13 {offsets = [64, 0], sizes = [16, 16], strides = [1, 1]} : vector<112x16xf32> to vector<16x16xf32>
    %182 = vector.extract_strided_slice %14 {offsets = [64, 0], sizes = [16, 16], strides = [1, 1]} : vector<112x16xf32> to vector<16x16xf32>
    %183 = vector.extract_strided_slice %15 {offsets = [64, 0], sizes = [16, 16], strides = [1, 1]} : vector<112x16xf32> to vector<16x16xf32>
    %184 = tpu.concatenate %176, %177, %178, %179, %180, %181, %182, %183 in 0 : vector<16x16xf32>, vector<16x16xf32>, vector<16x16xf32>, vector<16x16xf32>, vector<16x16xf32>, vector<16x16xf32>, vector<16x16xf32>, vector<16x16xf32> -> vector<128x16xf32>
    %185 = vector.extract_strided_slice %8 {offsets = [80, 0], sizes = [16, 16], strides = [1, 1]} : vector<112x16xf32> to vector<16x16xf32>
    %186 = vector.extract_strided_slice %9 {offsets = [80, 0], sizes = [16, 16], strides = [1, 1]} : vector<112x16xf32> to vector<16x16xf32>
    %187 = vector.extract_strided_slice %10 {offsets = [80, 0], sizes = [16, 16], strides = [1, 1]} : vector<112x16xf32> to vector<16x16xf32>
    %188 = vector.extract_strided_slice %11 {offsets = [80, 0], sizes = [16, 16], strides = [1, 1]} : vector<112x16xf32> to vector<16x16xf32>
    %189 = vector.extract_strided_slice %12 {offsets = [80, 0], sizes = [16, 16], strides = [1, 1]} : vector<112x16xf32> to vector<16x16xf32>
    %190 = vector.extract_strided_slice %13 {offsets = [80, 0], sizes = [16, 16], strides = [1, 1]} : vector<112x16xf32> to vector<16x16xf32>
    %191 = vector.extract_strided_slice %14 {offsets = [80, 0], sizes = [16, 16], strides = [1, 1]} : vector<112x16xf32> to vector<16x16xf32>
    %192 = vector.extract_strided_slice %15 {offsets = [80, 0], sizes = [16, 16], strides = [1, 1]} : vector<112x16xf32> to vector<16x16xf32>
    %193 = tpu.concatenate %185, %186, %187, %188, %189, %190, %191, %192 in 0 : vector<16x16xf32>, vector<16x16xf32>, vector<16x16xf32>, vector<16x16xf32>, vector<16x16xf32>, vector<16x16xf32>, vector<16x16xf32>, vector<16x16xf32> -> vector<128x16xf32>
    %194 = tpu.concatenate %175, %184, %193 in 1 : vector<128x16xf32>, vector<128x16xf32>, vector<128x16xf32> -> vector<128x48xf32>
    %cst_49 = arith.constant dense<0.000000e+00> : vector<128x16xf32>
    %195 = tpu.matmul %194, %166, %cst_49 {dimension_numbers = #tpu.dot_dimension_numbers<[1], [0], [0], [1], [0, 0, 1, 1], [], []>} : vector<128x48xf32>, vector<48x16xf32>, vector<128x16xf32> -> vector<128x16xf32>
    %196 = vector.extract_strided_slice %195 {offsets = [0, 0], sizes = [16, 16], strides = [1, 1]} : vector<128x16xf32> to vector<16x16xf32>
    %197 = vector.extract_strided_slice %195 {offsets = [16, 0], sizes = [16, 16], strides = [1, 1]} : vector<128x16xf32> to vector<16x16xf32>
    %198 = vector.extract_strided_slice %195 {offsets = [32, 0], sizes = [16, 16], strides = [1, 1]} : vector<128x16xf32> to vector<16x16xf32>
    %199 = vector.extract_strided_slice %195 {offsets = [48, 0], sizes = [16, 16], strides = [1, 1]} : vector<128x16xf32> to vector<16x16xf32>
    %200 = vector.extract_strided_slice %195 {offsets = [64, 0], sizes = [16, 16], strides = [1, 1]} : vector<128x16xf32> to vector<16x16xf32>
    %201 = vector.extract_strided_slice %195 {offsets = [80, 0], sizes = [16, 16], strides = [1, 1]} : vector<128x16xf32> to vector<16x16xf32>
    %202 = vector.extract_strided_slice %195 {offsets = [96, 0], sizes = [16, 16], strides = [1, 1]} : vector<128x16xf32> to vector<16x16xf32>
    %203 = vector.extract_strided_slice %195 {offsets = [112, 0], sizes = [16, 16], strides = [1, 1]} : vector<128x16xf32> to vector<16x16xf32>
    %204 = tpu.concatenate %196, %197, %198, %199, %200, %201, %202, %203 in 1 : vector<16x16xf32>, vector<16x16xf32>, vector<16x16xf32>, vector<16x16xf32>, vector<16x16xf32>, vector<16x16xf32>, vector<16x16xf32>, vector<16x16xf32> -> vector<16x128xf32>
    %205 = arith.addf %7, %204 : vector<16x128xf32>
    %cst_50 = arith.constant 0.000000e+00 : f32
    %206 = vector.broadcast %cst_50 : f32 to vector<16x128xf32>
    %207 = arith.maximumf %205, %206 : vector<16x128xf32>
    %c0_51 = arith.constant 0 : index
    %c0_52 = arith.constant 0 : index
    %c0_53 = arith.constant 0 : index
    %208 = vector.load %arg5[%c0_51, %c0_52, %c0_53] : memref<1x16x128xf32, #tpu.memory_space<vmem>>, vector<1x16x128xf32>
    %209 = vector.shape_cast %208 : vector<1x16x128xf32> to vector<16x128xf32>
    %210 = vector.shape_cast %207 : vector<16x128xf32> to vector<1x16x128xf32>
    tpu.vector_store %arg5[%c0_51, %c0_52, %c0_53], %210 {strides = array<i32>} : memref<1x16x128xf32, #tpu.memory_space<vmem>>, vector<1x16x128xf32>,
    return
  }
  func.func @transform_0(%arg0: i32) -> (i32, i32, i32) {
    %c0_i32 = arith.constant 0 : i32
    %c0_i32_0 = arith.constant 0 : i32
    %c0_i32_1 = arith.constant 0 : i32
    return %arg0, %c0_i32, %c0_i32_0 : i32, i32, i32
  }
  func.func @transform_1(%arg0: i32) -> (i32, i32, i32) {
    %c0_i32 = arith.constant 0 : i32
    %c0_i32_0 = arith.constant 0 : i32
    %c0_i32_1 = arith.constant 0 : i32
    %c0_i32_2 = arith.constant 0 : i32
    return %c0_i32, %c0_i32_0, %c0_i32_1 : i32, i32, i32
  }
  func.func @transform_2(%arg0: i32) -> (i32, i32) {
    %c0_i32 = arith.constant 0 : i32
    %c0_i32_0 = arith.constant 0 : i32
    %c0_i32_1 = arith.constant 0 : i32
    return %c0_i32, %c0_i32_0 : i32, i32
  }
  func.func @transform_3(%arg0: i32) -> (i32, i32) {
    %c0_i32 = arith.constant 0 : i32
    %c0_i32_0 = arith.constant 0 : i32
    %c0_i32_1 = arith.constant 0 : i32
    return %c0_i32, %c0_i32_0 : i32, i32
  }
  func.func @transform_4(%arg0: i32) -> (i32, i32, i32) {
    %c0_i32 = arith.constant 0 : i32
    %c0_i32_0 = arith.constant 0 : i32
    %c0_i32_1 = arith.constant 0 : i32
    return %arg0, %c0_i32, %c0_i32_0 : i32, i32, i32
  }
}

</mosaic_0001>

<bundles_post_ra>
// kernel: tpu_custom_call.1
= control target key start
LH: loop header
LB: loop body
LE: loop exit
PB: predicated region body
PF: predicated region fallthrough
CT: control target
= control target key end

     0   :  { %9 = vsyncpa [#allocation3], 0  ;;  %s5428_s0 = inlined_call_operand.vmem [shape: f32[2,4,128], index: 0, kind: input, shape index: {}]   ;;  %s5429_s1 = inlined_call_operand.vmem [shape: f32[3,16,16], index: 1, kind: input, shape index: {}]   ;;  %s5430_s2 = inlined_call_operand.vmem [shape: f32[112,4], index: 2, kind: input, shape index: {}]   ;;  %s5431_s3 = inlined_call_operand.vmem [shape: f32[112,1], index: 3, kind: input, shape index: {}]   ;;  %s5432_s4 = inlined_call_operand.hbm [shape: f32[2,16,128], index: 4, kind: output, shape index: {}]  }
   0x1   :  { %11 = vsyncpa [#allocation3 + $0x1], 0  ;;  %s4654_s15 = smov 0   ;;  %s4656_s16 = smov 0  }
   0x2   :  { %s4658_s17 = smov 0   ;;  %s4660_s18 = smov 0  }
   0x3 LB: > { %s4675_s19 = sadd.s32 4294967295, %s4616_s18   ;;  %s4067_s20 = sadd.s32 4294967294, %s4616_s18   ;;  %s4616_s18 = sphi %s4660_s18, %s5438_s18   ;;  %s4612_s17 = sphi %s4658_s17, %s5437_s17   ;;  %s4608_s16 = sphi %s4656_s16, %s5436_s16   ;;  %s4604_s15 = sphi %s4654_s15, %s5435_s15  }
   0x4   : > { %s4679_s21 = sadd.s32 1, %s4616_s18   ;;  %s113_s22 = sadd.s32 1, %s4612_s17 }
   0x5   : > { %s110_s23 = ssub.s32 %s4616_s18, %s4679_s21  ;;  %p123_p0 = scmp.ne.s32.totalorder %s4612_s17, %s4608_s16 }
   0x6   : > { %p111_p1 = scmp.eq.s32.totalorder %s110_s23, 0  ;;  %p124_p2 = scmp.eq.s32.totalorder %s4675_s19, 1 }
   0x7   : > { %p129_p3 = scmp.ne.s32.totalorder %s4608_s16, %s4604_s15  ;;  %p130_p4 = scmp.eq.s32.totalorder %s4067_s20, 1 }
   0x8   : > { %s4690_s24 = scalar_select %p111_p1, %s4612_s17, %s113_s22  }
   0x9   : > { %p4692_p5 = por %p124_p2, %p123_p0  ;;  %p4696_p6 = por %p130_p4, %p129_p3 }
   0xa   : > { %p4070_p7 = scmp.ge.s32.totalorder %s4616_s18, 1  ;;  %p164_p8 = scmp.lt.s32.totalorder %s4616_s18, 3 }
   0xc   : > { %p165_p9 = pnand %p4070_p7, %p164_p8 }
   0xd   : > { %p189_p10 = scmp.lt.s32.totalorder (!%p165_p9), %s4675_s19, 1  ;;  %s4619_s11 = smov (!%p165_p9), 112  }
   0xe   : > { %168 = sbr.rel (%p165_p9) target bundleno = 1401 (0x579), region = 36  ;;  %s4620_s12 = smov (!%p165_p9), 96  }
   0xf   : > { %s4621_s13 = smov (!%p165_p9), 64   ;;  %s4622_s14 = smov (!%p165_p9), 80  }
  0x10   : > { %s4623_s20 = smov (!%p165_p9), 32   ;;  %s4624_s22 = smov (!%p165_p9), 48  }
  0x11   : > { %s4625_s23 = smov (!%p165_p9), 16   ;;  %s4626_s5 = smov (!%p165_p9), [#allocation2]  }
  0x12   : > { %s4560_s6 = sshll.u32 (!%p165_p9), %s4626_s5, 4  ;;  %s4561_s6 = int_to_ptr.vmem [resolvable:$false] %s4560_s6 }
  0x13   : > { %v194_v0 = vld [vmem:[%s5430_s2] sm:$0xff]  ;;  %vm292_vm0 = vcmask 31744   ;;  %s190_s29 = scalar_select %p189_p10, %s4675_s19, 1  ;;  %v4618_v1 = vmov 0   ;;  %vm335_vm1 = vcmask 1043456   ;;  %v195_v4 = vld [vmem:[%s5430_s2 + $0x8] sm:$0xff] }
  0x14   : > { %4297 = vmatprep.mubr.msk.f32.mxu0 %vm292_vm0, %v194_v0  ;;  %4536 = vset.pattern.permute.xlu0 %v4618_v1  ;;  %v208_v2 = vld [vmem:[%s5431_s3] sm:$0xff]  ;;  %v209_v5 = vld [vmem:[%s5431_s3 + $0x8] sm:$0xff]  ;;  %v196_v6 = vld [vmem:[%s5430_s2 + $0x10] sm:$0xff]  ;;  %vm3700_vm2 = vcmask 261120   ;;  %vm1445_vm3 = vcmask 130048   ;;  %vm3717_vm4 = vcmask 392192  }
  0x15   : > { %4537 = vset.pattern.permute.xlu1 %v4618_v1  ;;  %s4072_s30 = sshll.u32 %s190_s29, 2  ;;  %224 = vperm.xlu0 %4536, %v208_v2   ;;  %v210_v7 = vld [vmem:[%s5431_s3 + $0x10] sm:$0xff]  ;;  %v211_v8 = vld [vmem:[%s5431_s3 + $0x18] sm:$0xff]  ;;  %v212_v10 = vld [vmem:[%s5431_s3 + $0x20] sm:$0xff]  ;;  %vm3973_vm5 = vcmask 523264   ;;  %vm3976_vm6 = vcmask 654336  }
  0x16   : > { %s192_s9 = scalar_lea.vmem %s5428_s0, %s4072_s30  ;;  %234 = vperm.xlu1 %4537, %v210_v7   ;;  %v197_v9 = vld [vmem:[%s5430_s2 + $0x18] sm:$0xff]  ;;  %v198_v11 = vld [vmem:[%s5430_s2 + $0x20] sm:$0xff]  ;;  %v213_v12 = vld [vmem:[%s5431_s3 + $0x28] sm:$0xff]  ;;  %vm3979_vm7 = vcmask 785408   ;;  %vm3982_vm8 = vcmask 916480   ;;  %s4562_s7 = scalar_lea.vmem %s4561_s6, 512 }
  0x17   : > { %v193_v3 = vld [vmem:[%s192_s9] sm:$0xf]  ;;  %v199_v13 = vld [vmem:[%s5430_s2 + $0x28] sm:$0xff]  ;;  %v214_v14 = vld [vmem:[%s5431_s3 + $0x30] sm:$0xff] }
  0x18   : > { %4295 = vmatprep.subr.msk.mxu0 %vm335_vm1, %v193_v3  ;;  %v200_v15 = vld [vmem:[%s5430_s2 + $0x30] sm:$0xff]  ;;  %v215_v16 = vld [vmem:[%s5431_s3 + $0x38] sm:$0xff]  ;;  %v216_v18 = vld [vmem:[%s5431_s3 + $0x40] sm:$0xff] }
  0x19   : > { %4296 = vmatpush3.msk.msra.mxu0 %vm335_vm1, %v193_v3  ;;  %229 = vperm.xlu0 %4536, %v209_v5   ;;  %v201_v17 = vld [vmem:[%s5430_s2 + $0x38] sm:$0xff]  ;;  %v202_v19 = vld [vmem:[%s5430_s2 + $0x40] sm:$0xff]  ;;  %v217_v20 = vld [vmem:[%s5431_s3 + $0x48] sm:$0xff] }
  0x1a   : > { %4298 = vmatmul.mubr.msk.f32.vlgmr.msra.gmra.mxu0 %vm292_vm0, %v195_v4  ;;  %239 = vperm.xlu1 %4537, %v211_v8   ;;  %v203_v21 = vld [vmem:[%s5430_s2 + $0x48] sm:$0xff]  ;;  %v218_v22 = vld [vmem:[%s5431_s3 + $0x50] sm:$0xff]  ;;  %v219_v24 = vld [vmem:[%s5431_s3 + $0x58] sm:$0xff] }
  0x1b   : > { %4300 = vmatprep.mubr.msk.f32.mxu0 %vm292_vm0, %v196_v6  ;;  %v204_v23 = vld [vmem:[%s5430_s2 + $0x50] sm:$0xff]  ;;  %v205_v25 = vld [vmem:[%s5430_s2 + $0x58] sm:$0xff]  ;;  %v220_v26 = vld [vmem:[%s5431_s3 + $0x60] sm:$0xff] }
  0x1c   : > { %v206_v27 = vld [vmem:[%s5430_s2 + $0x60] sm:$0xff]  ;;  %v221_v28 = vld [vmem:[%s5431_s3 + $0x68] sm:$0xff] }
  0x1d   : > { %244 = vperm.xlu0 %4536, %v212_v10   ;;  %v207_v29 = vld [vmem:[%s5430_s2 + $0x68] sm:$0xff] }
  0x1e   : > { %4301 = vmatmul.mubr.msk.f32.gmra.mxu0 %vm292_vm0, %v197_v9  ;;  %249 = vperm.xlu1 %4537, %v213_v12  }
  0x1f   : > { %4303 = vmatprep.mubr.msk.f32.mxu0 %vm292_vm0, %v198_v11 }
  0x21   : > { %254 = vperm.xlu0 %4536, %v214_v14  }
  0x22   : > { %4304 = vmatmul.mubr.msk.f32.gmra.mxu0 %vm292_vm0, %v199_v13  ;;  %259 = vperm.xlu1 %4537, %v215_v16  }
  0x23   : > { %4306 = vmatprep.mubr.msk.f32.mxu0 %vm292_vm0, %v200_v15 }
  0x25   : > { %264 = vperm.xlu0 %4536, %v216_v18  }
  0x26   : > { %4307 = vmatmul.mubr.msk.f32.gmra.mxu0 %vm292_vm0, %v201_v17  ;;  %269 = vperm.xlu1 %4537, %v217_v20  }
  0x27   : > { %4309 = vmatprep.mubr.msk.f32.mxu0 %vm292_vm0, %v202_v19 }
  0x29   : > { %274 = vperm.xlu0 %4536, %v218_v22  }
  0x2a   : > { %4310 = vmatmul.mubr.msk.f32.gmra.mxu0 %vm292_vm0, %v203_v21  ;;  %279 = vperm.xlu1 %4537, %v219_v24  }
  0x2b   : > { %4312 = vmatprep.mubr.msk.f32.mxu0 %vm292_vm0, %v204_v23 }
  0x2d   : > { %284 = vperm.xlu0 %4536, %v220_v26  }
  0x2e   : > { %4313 = vmatmul.mubr.msk.f32.gmra.mxu0 %vm292_vm0, %v205_v25  ;;  %289 = vperm.xlu1 %4537, %v221_v28  }
  0x2f   : > { %4315 = vmatprep.mubr.msk.f32.mxu0 %vm292_vm0, %v206_v27 }
  0x32   : > { %4316 = vmatmul.mubr.msk.f32.gmra.mxu0 %vm292_vm0, %v207_v29 }
  0x90   : > { %v225_v30 = vpop.permute.xlu0 %224 }
  0x91   : > { %v235_v31 = vpop.permute.xlu1 %234 }
  0x94   : > { %v230_v32 = vpop.permute.xlu0 %229 }
  0x95   : > { %v240_v36 = vpop.permute.xlu1 %239 }
  0x98   : > { %v245_v43 = vpop.permute.xlu0 %244 }
  0x99   : > { %v250_v46 = vpop.permute.xlu1 %249 }
  0x9c   : > { %v4866_v48 = vpop.permute.xlu0 %254 }
  0x9d   : > { %v4868_v49 = vpop.permute.xlu1 %259 }
  0xa0   : > { %v4870_v50 = vpop.permute.xlu0 %264 }
  0xa1   : > { %v4872_v51 = vpop.permute.xlu1 %269 }
  0xa4   : > { %v4874_v52 = vpop.permute.xlu0 %274 }
  0xa5   : > { %v4876_v53 = vpop.permute.xlu1 %279 }
  0xa8   : > { %v4878_v54 = vpop.permute.xlu0 %284 }
  0xa9   : > { %v4880_v56 = vpop.permute.xlu1 %289 }
  0xda   : > { %v4299_v33 = vpop.f32.mrf.mxu0 }
  0xdb   : > { %v4807_v34 = vadd.f32 %v4299_v33, %v230_v32 }
  0xdc   : > { %v405_v35 = vpop.f32.mrf.mxu0 }
  0xdd   : > { %v4809_v37 = vadd.f32 %v405_v35, %v225_v30  ;;  %1481 = vrot.lane.b32.xlu1 %v4807_v34, %s4619_s11 }
  0xde   : > { %v4302_v38 = vpop.f32.mrf.mxu0 }
  0xdf   : > { %v421_v39 = vadd.f32 %v4302_v38, %v240_v36  ;;  %475 = vrot.lane.b32.xlu0 %v4809_v37, %s4619_s11 }
  0xe0   : > { %v415_v40 = vpop.f32.mrf.mxu0 }
  0xe1   : > { %631 = vrot.lane.b32.xlu1 %v421_v39, %s4620_s12  ;;  %4353 = vmatprep.subr.msk.mxu0 %vm335_vm1, %v421_v39  ;;  %v4838_v45 = vadd.f32 %v415_v40, %v235_v31 }
  0xe2   : > { %4354 = vmatpush3.msk.msra.mxu0 %vm335_vm1, %v421_v39  ;;  %v4305_v41 = vpop.f32.mrf.mxu0 }
  0xe3   : > { %596 = vrot.lane.b32.xlu0 %v4809_v37, %s4620_s12  ;;  %v4844_v47 = vadd.f32 %v4305_v41, %v250_v46 }
  0xe4   : > { %v425_v42 = vpop.f32.mrf.mxu0 }
  0xe5   : > { %871 = vrot.lane.b32.xlu1 %v421_v39, %s4621_s13  ;;  %v4828_v44 = vadd.f32 %v425_v42, %v245_v43 }
  0xe7   : > { %716 = vrot.lane.b32.xlu0 %v4809_v37, %s4622_s14 }
  0xe9   : > { %1111 = vrot.lane.b32.xlu1 %v421_v39, %s4623_s20 }
  0xeb   : > { %836 = vrot.lane.b32.xlu0 %v4809_v37, %s4621_s13 }
  0xed   : > { %1602 = vrot.lane.b32.xlu1 %v4807_v34, %s4620_s12 }
  0xef   : > { %956 = vrot.lane.b32.xlu0 %v4809_v37, %s4624_s22 }
  0xf1   : > { %1757 = vrot.lane.b32.xlu1 %v4828_v44, %s4622_s14 }
  0xf3   : > { %1076 = vrot.lane.b32.xlu0 %v4809_v37, %s4623_s20 }
  0xf5   : > { %2082 = vrot.lane.b32.xlu1 %v4807_v34, %s4623_s20 }
  0xf7   : > { %1196 = vrot.lane.b32.xlu0 %v4809_v37, %s4625_s23 }
  0xf9   : > { %2848 = vrot.lane.b32.xlu1 %v4838_v45, %s4621_s13 }
  0xfb   : > { %511 = vrot.lane.b32.xlu0 %v421_v39, %s4619_s11 }
  0xfd   : > { %2643 = vrot.lane.b32.xlu1 %v4844_v47, %s4620_s12 }
  0xff   : > { %751 = vrot.lane.b32.xlu0 %v421_v39, %s4622_s14 }
 0x101   : > { %2883 = vrot.lane.b32.xlu1 %v4844_v47, %s4621_s13 }
 0x103   : > { %991 = vrot.lane.b32.xlu0 %v421_v39, %s4624_s22 }
 0x105   : > { %3123 = vrot.lane.b32.xlu1 %v4844_v47, %s4623_s20 }
 0x107   : > { %1231 = vrot.lane.b32.xlu0 %v421_v39, %s4625_s23 }
 0x109   : > { %2763 = vrot.lane.b32.xlu1 %v4844_v47, %s4622_s14 }
 0x10b   : > { %1517 = vrot.lane.b32.xlu0 %v4828_v44, %s4619_s11 }
 0x10d   : > { %3003 = vrot.lane.b32.xlu1 %v4844_v47, %s4624_s22 }
 0x10f   : > { %1637 = vrot.lane.b32.xlu0 %v4828_v44, %s4620_s12 }
 0x113   : > { %1722 = vrot.lane.b32.xlu0 %v4807_v34, %s4622_s14 }
 0x14f   : > { %v1482_v58 = vpop.permute.xlu1 %1481 }
 0x151   : > { %v476_v55 = vpop.permute.xlu0 %475 }
 0x152   : > { %478 = vxpose.xlu1.b32.start.end [1/1] (short) (narrow) %v476_v55, 16 }
 0x153   : > { %v632_v60 = vpop.permute.xlu1 %631 }
 0x155   : > { %v597_v57 = vpop.permute.xlu0 %596 }
 0x156   : > { %599 = vxpose.xlu0.b32.start.end [1/1] (short) (narrow) %v597_v57, 16 }
 0x157   : > { %v872_v63 = vpop.permute.xlu1 %871 }
 0x159   : > { %v717_v59 = vpop.permute.xlu0 %716 }
 0x15a   : > { %719 = vxpose.xlu1.b32.start.end [1/1] (short) (narrow) %v717_v59, 16 }
 0x15b   : > { %v4882_v1 = vpop.permute.xlu1 %1111 }
 0x15d   : > { %v837_v61 = vpop.permute.xlu0 %836 }
 0x15e   : > { %839 = vxpose.xlu0.b32.start.end [1/1] (short) (narrow) %v837_v61, 16 }
 0x15f   : > { %v1603_v4 = vpop.permute.xlu1 %1602 }
 0x161   : > { %v957_v62 = vpop.permute.xlu0 %956 }
 0x162   : > { %959 = vxpose.xlu1.b32.start.end [1/1] (short) (narrow) %v957_v62, 16 }
 0x163   : > { %v4894_v10 = vpop.permute.xlu1 %1757 }
 0x165   : > { %v1077_v0 = vpop.permute.xlu0 %1076 }
 0x166   : > { %1079 = vxpose.xlu0.b32.start.end [1/1] (short) (narrow) %v1077_v0, 16 }
 0x167   : > { %v2083_v12 = vpop.permute.xlu1 %2082 }
 0x169   : > { %v1197_v2 = vpop.permute.xlu0 %1196 }
 0x16a   : > { %1199 = vxpose.xlu1.b32.start.end [1/1] (short) (narrow) %v1197_v2, 16 }
 0x16b   : > { %1316 = vxpose.xlu0.b32.start.end [1/1] (short) (narrow) %v4809_v37, 16  ;;  %v4896_v13 = vpop.permute.xlu1 %2848 }
 0x16d   : > { %v512_v3 = vpop.permute.xlu0 %511 }
 0x16e   : > { %4318 = vmatprep.subr.msk.mxu1 %vm335_vm1, %v512_v3 }
 0x16f   : > { %1605 = vxpose.xlu1.b32.start.end [1/1] (short) (narrow) %v1603_v4, 16  ;;  %4319 = vmatpush3.msk.msra.mxu1 %vm335_vm1, %v512_v3  ;;  %v4898_v14 = vpop.permute.xlu1 %2643 }
 0x170   : > { %1484 = vxpose.xlu0.b32.start.end [1/1] (short) (narrow) %v1482_v58, 16  ;;  %4323 = vmatprep.subr.msk.mxu1 %vm335_vm1, %v632_v60  ;;  %v4308_v58 = vpop.f32.mrf.mxu0 }
 0x171   : > { %v752_v5 = vpop.permute.xlu0 %751 }
 0x172   : > { %v435_v61 = vpop.f32.mrf.mxu0 }
 0x173   : > { %v4900_v15 = vpop.permute.xlu1 %2883 }
 0x175   : > { %v992_v6 = vpop.permute.xlu0 %991 }
 0x177   : > { %v4906_v16 = vpop.permute.xlu1 %3123 }
 0x179   : > { %v1232_v7 = vpop.permute.xlu0 %1231 }
 0x17b   : > { %v4910_v17 = vpop.permute.xlu1 %2763 }
 0x17d   : > { %v4888_v8 = vpop.permute.xlu0 %1517 }
 0x17f   : > { %v4916_v18 = vpop.permute.xlu1 %3003 }
 0x181   : > { %v4890_v9 = vpop.permute.xlu0 %1637 }
 0x182   : > { %4363 = vmatprep.subr.msk.mxu0 %vm335_vm1, %v4890_v9 }
 0x185   : > { %v1723_v11 = vpop.permute.xlu0 %1722 }
 0x186   : > { %1725 = vxpose.xlu0.b32.start.end [1/1] (short) (narrow) %v1723_v11, 16 }
 0x18b   : > { %2085 = vxpose.xlu0.b32.start.end [1/1] (short) (narrow) %v2083_v12, 16 }
 0x1b8   : > { %1842 = vrot.lane.b32.xlu0 %v4807_v34, %s4621_s13 }
 0x1bc   : > { %2608 = vrot.lane.b32.xlu0 %v4838_v45, %s4620_s12 }
 0x1c0   : > { %1962 = vrot.lane.b32.xlu0 %v4807_v34, %s4624_s22 }
 0x1c4   : > { %2202 = vrot.lane.b32.xlu0 %v4807_v34, %s4625_s23 }
 0x1c8   : > { %3088 = vrot.lane.b32.xlu0 %v4838_v45, %s4623_s20 }
 0x1cc   : > { %2487 = vrot.lane.b32.xlu0 %v4838_v45, %s4619_s11 }
 0x1ce   : > { %v494_v19 = vpop.trf.xlu1 }
 0x1cf   : > { %4320 = vmatprep.mubr.msk.f32.mxu1 %vm292_vm0, %v494_v19 }
 0x1d0   : > { %2728 = vrot.lane.b32.xlu0 %v4838_v45, %s4622_s14 }
 0x1d2   : > { %v495_v20 = vpop.trf.xlu1  ;;  %v615_v21 = vpop.trf.xlu0 }
 0x1d3   : > { %4321 = vmatmul.mubr.msk.f32.vlgmr.msra.gmra.mxu1 %vm292_vm0, %v495_v20 }
 0x1d4   : > { %4324 = vmatpush3.msk.msra.mxu1 %vm335_vm1, %v632_v60  ;;  %2968 = vrot.lane.b32.xlu0 %v4838_v45, %s4624_s22  ;;  %v4990_v60 = vadd.f32 %v4308_v58, %v4868_v49 }
 0x1d5   : > { %4328 = vmatprep.subr.msk.mxu1 %vm335_vm1, %v752_v5  ;;  %4325 = vmatprep.mubr.msk.f32.mxu1 %vm292_vm0, %v615_v21 }
 0x1d6   : > { %v735_v22 = vpop.trf.xlu1  ;;  %v616_v23 = vpop.trf.xlu0 }
 0x1d7   : > { %4326 = vmatmul.mubr.msk.f32.vlgmr.msra.gmra.mxu1 %vm292_vm0, %v616_v23 }
 0x1d8   : > { %4329 = vmatpush3.msk.msra.mxu1 %vm335_vm1, %v752_v5  ;;  %1877 = vrot.lane.b32.xlu0 %v4828_v44, %s4621_s13 }
 0x1d9   : > { %4333 = vmatprep.subr.msk.mxu1 %vm335_vm1, %v872_v63  ;;  %4330 = vmatprep.mubr.msk.f32.mxu1 %vm292_vm0, %v735_v22 }
 0x1da   : > { %v736_v24 = vpop.trf.xlu1  ;;  %v855_v25 = vpop.trf.xlu0 }
 0x1db   : > { %4331 = vmatmul.mubr.msk.f32.vlgmr.msra.gmra.mxu1 %vm292_vm0, %v736_v24 }
 0x1dc   : > { %4334 = vmatpush3.msk.msra.mxu1 %vm335_vm1, %v872_v63  ;;  %3208 = vrot.lane.b32.xlu0 %v4838_v45, %s4625_s23 }
 0x1dd   : > { %4338 = vmatprep.subr.msk.mxu1 %vm335_vm1, %v992_v6  ;;  %4335 = vmatprep.mubr.msk.f32.mxu1 %vm292_vm0, %v855_v25 }
 0x1de   : > { %v975_v26 = vpop.trf.xlu1  ;;  %v856_v27 = vpop.trf.xlu0 }
 0x1df   : > { %4336 = vmatmul.mubr.msk.f32.vlgmr.msra.gmra.mxu1 %vm292_vm0, %v856_v27 }
 0x1e0   : > { %4339 = vmatpush3.msk.msra.mxu1 %vm335_vm1, %v992_v6  ;;  %2117 = vrot.lane.b32.xlu0 %v4828_v44, %s4623_s20 }
 0x1e1   : > { %4343 = vmatprep.subr.msk.mxu1 %vm335_vm1, %v4882_v1  ;;  %4340 = vmatprep.mubr.msk.f32.mxu1 %vm292_vm0, %v975_v26 }
 0x1e2   : > { %v976_v28 = vpop.trf.xlu1  ;;  %v1095_v29 = vpop.trf.xlu0 }
 0x1e3   : > { %4341 = vmatmul.mubr.msk.f32.vlgmr.msra.gmra.mxu1 %vm292_vm0, %v976_v28 }
 0x1e4   : > { %4344 = vmatpush3.msk.msra.mxu1 %vm335_vm1, %v4882_v1  ;;  %1997 = vrot.lane.b32.xlu0 %v4828_v44, %s4624_s22 }
 0x1e5   : > { %4348 = vmatprep.subr.msk.mxu1 %vm335_vm1, %v1232_v7  ;;  %4345 = vmatprep.mubr.msk.f32.mxu1 %vm292_vm0, %v1095_v29 }
 0x1e6   : > { %v1215_v30 = vpop.trf.xlu1  ;;  %v1096_v31 = vpop.trf.xlu0 }
 0x1e7   : > { %4346 = vmatmul.mubr.msk.f32.vlgmr.msra.gmra.mxu1 %vm292_vm0, %v1096_v31 }
 0x1e8   : > { %4349 = vmatpush3.msk.msra.mxu1 %vm335_vm1, %v1232_v7  ;;  %2237 = vrot.lane.b32.xlu0 %v4828_v44, %s4625_s23 }
 0x1e9   : > { %4358 = vmatprep.subr.msk.mxu1 %vm335_vm1, %v4888_v8  ;;  %4350 = vmatprep.mubr.msk.f32.mxu1 %vm292_vm0, %v1215_v30 }
 0x1ea   : > { %v1216_v32 = vpop.trf.xlu1  ;;  %v1332_v33 = vpop.trf.xlu0 }
 0x1eb   : > { %4351 = vmatmul.mubr.msk.f32.vlgmr.msra.gmra.mxu1 %vm292_vm0, %v1216_v32  ;;  %4355 = vmatprep.mubr.msk.f32.mxu0 %vm292_vm0, %v1332_v33 }
 0x1ec   : > { %4359 = vmatpush3.msk.msra.mxu1 %vm335_vm1, %v4888_v8  ;;  %2523 = vrot.lane.b32.xlu0 %v4844_v47, %s4619_s11 }
 0x1ed   : > { %4368 = vmatprep.subr.msk.mxu1 %vm335_vm1, %v4894_v10 }
 0x1ee   : > { %v1333_v35 = vpop.trf.xlu0  ;;  %v1621_v36 = vpop.trf.xlu1 }
 0x1ef   : > { %4356 = vmatmul.mubr.msk.f32.vlgmr.msra.gmra.mxu0 %vm292_vm0, %v1333_v35 }
 0x1f0   : > { %4364 = vmatpush3.msk.msra.mxu0 %vm335_vm1, %v4890_v9  ;;  %3243 = vrot.lane.b32.xlu0 %v4844_v47, %s4625_s23 }
 0x1f1   : > { %4365 = vmatprep.mubr.msk.f32.mxu0 %vm292_vm0, %v1621_v36 }
 0x1f2   : > { %v1500_v37 = vpop.trf.xlu0  ;;  %v1622_v38 = vpop.trf.xlu1 }
 0x1f3   : > { %4360 = vmatprep.mubr.msk.f32.mxu1 %vm292_vm0, %v1500_v37  ;;  %4366 = vmatmul.mubr.msk.f32.vlgmr.msra.gmra.mxu0 %vm292_vm0, %v1622_v38 }
 0x1f6   : > { %v1501_v39 = vpop.trf.xlu0 }
 0x1f7   : > { %4361 = vmatmul.mubr.msk.f32.vlgmr.msra.gmra.mxu1 %vm292_vm0, %v1501_v39 }
 0x1f8   : > { %4369 = vmatpush3.msk.msra.mxu1 %vm335_vm1, %v4894_v10 }
 0x202   : > { %v1741_v40 = vpop.trf.xlu0 }
 0x203   : > { %4370 = vmatprep.mubr.msk.f32.mxu1 %vm292_vm0, %v1741_v40 }
 0x206   : > { %v1742_v41 = vpop.trf.xlu0 }
 0x207   : > { %4371 = vmatmul.mubr.msk.f32.vlgmr.msra.gmra.mxu1 %vm292_vm0, %v1742_v41 }
 0x20a   : > { %v4984_v42 = vpop.trf.xlu0 }
 0x20e   : > { %3328 = vxpose.xlu0.b32.start.end [1/1] (short) (narrow) %v4838_v45, 16  ;;  %v4986_v43 = vpop.trf.xlu0  ;;  %v4995_v45 = vadd.f32 %v435_v61, %v4866_v48 }
 0x22a   : > { %v1843_v46 = vpop.permute.xlu0 %1842 }
 0x22b   : > { %1845 = vxpose.xlu1.b32.start.end [1/1] (short) (narrow) %v1843_v46, 16 }
 0x22e   : > { %v2609_v55 = vpop.permute.xlu0 %2608 }
 0x230   : > { %2322 = vxpose.xlu1.b32.start.end [1/1] (short) (narrow) %v4807_v34, 16  ;;  %v4311_v34 = vpop.f32.mrf.mxu0 }
 0x231   : > { %v451_v11 = vadd.f32 %v4311_v34, %v4872_v51 }
 0x232   : > { %v1963_v57 = vpop.permute.xlu0 %1962  ;;  %v445_v49 = vpop.f32.mrf.mxu0 }
 0x233   : > { %v446_v48 = vadd.f32 %v445_v49, %v4870_v50 }
 0x234   : > { %v5019_v6 = vpop.f32.mrf.mxu0 }
 0x235   : > { %2611 = vxpose.xlu1.b32.start.end [1/1] (short) (narrow) %v2609_v55, 16  ;;  %v461_v27 = vadd.f32 %v5019_v6, %v4876_v53 }
 0x236   : > { %v2203_v59 = vpop.permute.xlu0 %2202  ;;  %v455_v7 = vpop.f32.mrf.mxu0 }
 0x237   : > { %v456_v8 = vadd.f32 %v455_v7, %v4874_v52 }
 0x23a   : > { %1965 = vxpose.xlu1.b32.start.end [1/1] (short) (narrow) %v1963_v57, 16  ;;  %v3089_v62 = vpop.permute.xlu0 %3088 }
 0x23b   : > { %3496 = vrot.lane.b32.xlu0 %v4990_v60, %s4619_s11 }
 0x23e   : > { %v2488_v63 = vpop.permute.xlu0 %2487 }
 0x23f   : > { %3518 = vrot.lane.b32.xlu0 %v4995_v45, %s4624_s22  ;;  %2851 = vxpose.xlu1.b32.start.end [1/1] (short) (narrow) %v4896_v13, 16 }
 0x242   : > { %v2729_v0 = vpop.permute.xlu0 %2728 }
 0x243   : > { %3524 = vrot.lane.b32.xlu0 %v4995_v45, %s4623_s20 }
 0x244   : > { %2205 = vxpose.xlu1.b32.start.end [1/1] (short) (narrow) %v2203_v59, 16 }
 0x246   : > { %v2969_v1 = vpop.permute.xlu0 %2968 }
 0x247   : > { %3530 = vrot.lane.b32.xlu0 %v4995_v45, %s4625_s23 }
 0x249   : > { %3091 = vxpose.xlu1.b32.start.end [1/1] (short) (narrow) %v3089_v62, 16 }
 0x24a   : > { %v1878_v2 = vpop.permute.xlu0 %1877 }
 0x24b   : > { %3538 = vrot.lane.b32.xlu0 %v446_v48, %s4619_s11  ;;  %4373 = vmatprep.subr.msk.mxu0 %vm335_vm1, %v1878_v2 }
 0x24c   : > { %4374 = vmatpush3.msk.msra.mxu0 %vm335_vm1, %v1878_v2 }
 0x24e   : > { %2490 = vxpose.xlu1.b32.start.end [1/1] (short) (narrow) %v2488_v63, 16  ;;  %v3209_v3 = vpop.permute.xlu0 %3208 }
 0x24f   : > { %3542 = vrot.lane.b32.xlu0 %v446_v48, %s4620_s12 }
 0x252   : > { %v2118_v4 = vpop.permute.xlu0 %2117 }
 0x253   : > { %3546 = vrot.lane.b32.xlu0 %v446_v48, %s4622_s14  ;;  %2731 = vxpose.xlu1.b32.start.end [1/1] (short) (narrow) %v2729_v0, 16 }
 0x254   : > { %4383 = vmatprep.subr.msk.mxu0 %vm335_vm1, %v2118_v4 }
 0x256   : > { %v1998_v5 = vpop.permute.xlu0 %1997 }
 0x257   : > { %3550 = vrot.lane.b32.xlu0 %v446_v48, %s4621_s13  ;;  %4378 = vmatprep.subr.msk.mxu1 %vm335_vm1, %v1998_v5 }
 0x258   : > { %2971 = vxpose.xlu1.b32.start.end [1/1] (short) (narrow) %v2969_v1, 16  ;;  %4379 = vmatpush3.msk.msra.mxu1 %vm335_vm1, %v1998_v5 }
 0x25a   : > { %v5014_v50 = vpop.permute.xlu0 %2237 }
 0x25b   : > { %3554 = vrot.lane.b32.xlu0 %v446_v48, %s4624_s22  ;;  %4388 = vmatprep.subr.msk.mxu1 %vm335_vm1, %v5014_v50 }
 0x25d   : > { %3211 = vxpose.xlu1.b32.start.end [1/1] (short) (narrow) %v3209_v3, 16 }
 0x25e   : > { %v5043_v52 = vpop.permute.xlu0 %2523 }
 0x25f   : > { %3558 = vrot.lane.b32.xlu0 %v446_v48, %s4623_s20 }
 0x262   : > { %v5049_v9 = vpop.permute.xlu0 %3243 }
 0x263   : > { %3562 = vrot.lane.b32.xlu0 %v446_v48, %s4625_s23 }
 0x267   : > { %3568 = vrot.lane.b32.xlu0 %v456_v8, %s4619_s11 }
 0x26b   : > { %3572 = vrot.lane.b32.xlu0 %v456_v8, %s4620_s12 }
 0x26f   : > { %3576 = vrot.lane.b32.xlu0 %v456_v8, %s4622_s14 }
 0x273   : > { %3580 = vrot.lane.b32.xlu0 %v456_v8, %s4621_s13 }
 0x277   : > { %3584 = vrot.lane.b32.xlu0 %v456_v8, %s4624_s22 }
 0x27b   : > { %3588 = vrot.lane.b32.xlu0 %v456_v8, %s4623_s20 }
 0x27f   : > { %3592 = vrot.lane.b32.xlu0 %v456_v8, %s4625_s23  ;;  %3494 = vrot.lane.b32.xlu1 %v4995_v45, %s4619_s11 }
 0x283   : > { %3500 = vrot.lane.b32.xlu1 %v4995_v45, %s4620_s12 }
 0x287   : > { %3502 = vrot.lane.b32.xlu1 %v4990_v60, %s4620_s12 }
 0x28a   : > { %v5053_v10 = vpop.trf.xlu0 }
 0x28b   : > { %3506 = vrot.lane.b32.xlu1 %v4995_v45, %s4622_s14 }
 0x28e   : > { %v5059_v13 = vpop.trf.xlu0 }
 0x28f   : > { %3508 = vrot.lane.b32.xlu1 %v4990_v60, %s4622_s14 }
 0x293   : > { %3512 = vrot.lane.b32.xlu1 %v4995_v45, %s4621_s13 }
 0x297   : > { %3514 = vrot.lane.b32.xlu1 %v4990_v60, %s4621_s13 }
 0x29b   : > { %3520 = vrot.lane.b32.xlu1 %v4990_v60, %s4624_s22 }
 0x29f   : > { %3526 = vrot.lane.b32.xlu1 %v4990_v60, %s4623_s20 }
 0x2a3   : > { %3532 = vrot.lane.b32.xlu1 %v4990_v60, %s4625_s23 }
 0x2a7   : > { %v1861_v12 = vpop.trf.xlu1  ;;  %3540 = vrot.lane.b32.xlu1 %v451_v11, %s4619_s11 }
 0x2a8   : > { %4375 = vmatprep.mubr.msk.f32.mxu0 %vm292_vm0, %v1861_v12 }
 0x2ab   : > { %v1862_v19 = vpop.trf.xlu1  ;;  %3544 = vrot.lane.b32.xlu1 %v451_v11, %s4620_s12 }
 0x2ac   : > { %4376 = vmatmul.mubr.msk.f32.vlgmr.msra.gmra.mxu0 %vm292_vm0, %v1862_v19 }
 0x2ad   : > { %4384 = vmatpush3.msk.msra.mxu0 %vm335_vm1, %v2118_v4  ;;  %4385 = vmatprep.mubr.msk.f32.mxu0 %vm292_vm0, %v4984_v42  ;;  %v5067_v20 = vpop.permute.xlu0 %3496 }
 0x2ae   : > { %4393 = vmatprep.subr.msk.mxu0 %vm335_vm1, %v4828_v44 }
 0x2af   : > { %v2338_v51 = vpop.trf.xlu1  ;;  %3548 = vrot.lane.b32.xlu1 %v451_v11, %s4622_s14 }
 0x2b0   : > { %4386 = vmatmul.mubr.msk.f32.vlgmr.msra.gmra.mxu0 %vm292_vm0, %v4986_v43 }
 0x2b1   : > { %4394 = vmatpush3.msk.msra.mxu0 %vm335_vm1, %v4828_v44  ;;  %4395 = vmatprep.mubr.msk.f32.mxu0 %vm292_vm0, %v2338_v51  ;;  %v5077_v21 = vpop.permute.xlu0 %3518 }
 0x2b2   : > { %4403 = vmatprep.subr.msk.mxu0 %vm335_vm1, %v4898_v14 }
 0x2b3   : > { %v2339_v22 = vpop.trf.xlu1  ;;  %3552 = vrot.lane.b32.xlu1 %v451_v11, %s4621_s13 }
 0x2b4   : > { %4396 = vmatmul.mubr.msk.f32.vlgmr.msra.gmra.mxu0 %vm292_vm0, %v2339_v22 }
 0x2b5   : > { %4404 = vmatpush3.msk.msra.mxu0 %vm335_vm1, %v4898_v14  ;;  %v5085_v23 = vpop.permute.xlu0 %3524 }
 0x2b6   : > { %4413 = vmatprep.subr.msk.mxu0 %vm335_vm1, %v4900_v15 }
 0x2b7   : > { %v2627_v44 = vpop.trf.xlu1  ;;  %3556 = vrot.lane.b32.xlu1 %v451_v11, %s4624_s22 }
 0x2b8   : > { %4405 = vmatprep.mubr.msk.f32.mxu0 %vm292_vm0, %v2627_v44 }
 0x2b9   : > { %v5091_v24 = vpop.permute.xlu0 %3530 }
 0x2bb   : > { %v2628_v25 = vpop.trf.xlu1  ;;  %3560 = vrot.lane.b32.xlu1 %v451_v11, %s4623_s20 }
 0x2bc   : > { %4406 = vmatmul.mubr.msk.f32.vlgmr.msra.gmra.mxu0 %vm292_vm0, %v2628_v25 }
 0x2bd   : > { %4414 = vmatpush3.msk.msra.mxu0 %vm335_vm1, %v4900_v15  ;;  %v3539_v14 = vpop.permute.xlu0 %3538 }
 0x2be   : > { %4423 = vmatprep.subr.msk.mxu0 %vm335_vm1, %v4906_v16  ;;  %3596 = vrot.lane.b32.xlu0 %v3539_v14, %s4625_s23 }
 0x2bf   : > { %v1981_v26 = vpop.trf.xlu1  ;;  %3564 = vrot.lane.b32.xlu1 %v451_v11, %s4625_s23 }
 0x2c0   : > { %4380 = vmatprep.mubr.msk.f32.mxu1 %vm292_vm0, %v1981_v26 }
 0x2c1   : > { %v3543_v28 = vpop.permute.xlu0 %3542 }
 0x2c2   : > { %3600 = vrot.lane.b32.xlu0 %v3543_v28, %s4625_s23 }
 0x2c3   : > { %v1982_v29 = vpop.trf.xlu1  ;;  %3570 = vrot.lane.b32.xlu1 %v461_v27, %s4619_s11 }
 0x2c4   : > { %4381 = vmatmul.mubr.msk.f32.vlgmr.msra.gmra.mxu1 %vm292_vm0, %v1982_v29  ;;  %v4322_v29 = vpop.f32.mrf.mxu1 }
 0x2c5   : > { %4389 = vmatpush3.msk.msra.mxu1 %vm335_vm1, %v5014_v50  ;;  %v3547_v15 = vpop.permute.xlu0 %3546 }
 0x2c6   : > { %4398 = vmatprep.subr.msk.mxu1 %vm335_vm1, %v5043_v52  ;;  %3604 = vrot.lane.b32.xlu0 %v3547_v15, %s4625_s23 }
 0x2c7   : > { %v2867_v30 = vpop.trf.xlu1  ;;  %3574 = vrot.lane.b32.xlu1 %v461_v27, %s4620_s12 }
 0x2c8   : > { %4415 = vmatprep.mubr.msk.f32.mxu0 %vm292_vm0, %v2867_v30 }
 0x2c9   : > { %v3551_v53 = vpop.permute.xlu0 %3550 }
 0x2ca   : > { %3608 = vrot.lane.b32.xlu0 %v3551_v53, %s4625_s23  ;;  %v587_v53 = vpop.f32.mrf.mxu1 }
 0x2cb   : > { %v2868_v31 = vpop.trf.xlu1  ;;  %3578 = vrot.lane.b32.xlu1 %v461_v27, %s4622_s14 }
 0x2cc   : > { %4416 = vmatmul.mubr.msk.f32.vlgmr.msra.gmra.mxu0 %vm292_vm0, %v2868_v31 }
 0x2cd   : > { %4424 = vmatpush3.msk.msra.mxu0 %vm335_vm1, %v4906_v16  ;;  %v3555_v32 = vpop.permute.xlu0 %3554 }
 0x2ce   : > { %4433 = vmatprep.subr.msk.mxu0 %vm335_vm1, %v4844_v47  ;;  %3612 = vrot.lane.b32.xlu0 %v3555_v32, %s4625_s23 }
 0x2cf   : > { %v2221_v33 = vpop.trf.xlu1  ;;  %3582 = vrot.lane.b32.xlu1 %v461_v27, %s4621_s13 }
 0x2d0   : > { %4390 = vmatprep.mubr.msk.f32.mxu1 %vm292_vm0, %v2221_v33 }
 0x2d1   : > { %v3559_v35 = vpop.permute.xlu0 %3558 }
 0x2d2   : > { %3616 = vrot.lane.b32.xlu0 %v3559_v35, %s4625_s23  ;;  %v4327_v35 = vpop.f32.mrf.mxu1 }
 0x2d3   : > { %v2222_v36 = vpop.trf.xlu1  ;;  %3586 = vrot.lane.b32.xlu1 %v461_v27, %s4624_s22 }
 0x2d4   : > { %4391 = vmatmul.mubr.msk.f32.vlgmr.msra.gmra.mxu1 %vm292_vm0, %v2222_v36 }
 0x2d5   : > { %4399 = vmatpush3.msk.msra.mxu1 %vm335_vm1, %v5043_v52  ;;  %v3563_v16 = vpop.permute.xlu0 %3562 }
 0x2d6   : > { %4408 = vmatprep.subr.msk.mxu1 %vm335_vm1, %v4910_v17  ;;  %3620 = vrot.lane.b32.xlu0 %v3563_v16, %s4625_s23 }
 0x2d7   : > { %v3107_v37 = vpop.trf.xlu1  ;;  %3590 = vrot.lane.b32.xlu1 %v461_v27, %s4623_s20 }
 0x2d8   : > { %4425 = vmatprep.mubr.msk.f32.mxu0 %vm292_vm0, %v3107_v37 }
 0x2d9   : > { %v3569_v38 = vpop.permute.xlu0 %3568 }
 0x2da   : > { %3640 = vrot.lane.b32.xlu0 %v3569_v38, %s4623_s20  ;;  %v707_v38 = vpop.f32.mrf.mxu1 }
 0x2db   : > { %v3108_v39 = vpop.trf.xlu1  ;;  %3594 = vrot.lane.b32.xlu1 %v461_v27, %s4625_s23 }
 0x2dc   : > { %4426 = vmatmul.mubr.msk.f32.vlgmr.msra.gmra.mxu0 %vm292_vm0, %v3108_v39 }
 0x2dd   : > { %4434 = vmatpush3.msk.msra.mxu0 %vm335_vm1, %v4844_v47  ;;  %v3573_v40 = vpop.permute.xlu0 %3572  ;;  %4435 = vmatprep.mubr.msk.f32.mxu0 %vm292_vm0, %v5053_v10 }
 0x2de   : > { %3644 = vrot.lane.b32.xlu0 %v3573_v40, %s4623_s20 }
 0x2df   : > { %v2506_v41 = vpop.trf.xlu1 }
 0x2e0   : > { %4400 = vmatprep.mubr.msk.f32.mxu1 %vm292_vm0, %v2506_v41  ;;  %4436 = vmatmul.mubr.msk.f32.vlgmr.msra.gmra.mxu0 %vm292_vm0, %v5059_v13 }
 0x2e1   : > { %v3577_v42 = vpop.permute.xlu0 %3576 }
 0x2e2   : > { %3648 = vrot.lane.b32.xlu0 %v3577_v42, %s4623_s20 }
 0x2e3   : > { %v2507_v43 = vpop.trf.xlu1 }
 0x2e4   : > { %4401 = vmatmul.mubr.msk.f32.vlgmr.msra.gmra.mxu1 %vm292_vm0, %v2507_v43 }
 0x2e5   : > { %4409 = vmatpush3.msk.msra.mxu1 %vm335_vm1, %v4910_v17  ;;  %v3581_v47 = vpop.permute.xlu0 %3580  ;;  %v3684_v17 = vsel %vm1445_vm3, %v4995_v45, %v3563_v16 }
 0x2e6   : > { %4418 = vmatprep.subr.msk.mxu1 %vm335_vm1, %v4916_v18  ;;  %3652 = vrot.lane.b32.xlu0 %v3581_v47, %s4623_s20  ;;  %v4332_v47 = vpop.f32.mrf.mxu1 }
 0x2e7   : > { %v2747_v46 = vpop.trf.xlu1 }
 0x2e8   : > { %4410 = vmatprep.mubr.msk.f32.mxu1 %vm292_vm0, %v2747_v46 }
 0x2e9   : > { %v3585_v55 = vpop.permute.xlu0 %3584 }
 0x2ea   : > { %3656 = vrot.lane.b32.xlu0 %v3585_v55, %s4623_s20  ;;  %v5221_v55 = vpop.f32.mrf.mxu0 }
 0x2eb   : > { %v2748_v57 = vpop.trf.xlu1 }
 0x2ec   : > { %4411 = vmatmul.mubr.msk.f32.vlgmr.msra.gmra.mxu1 %vm292_vm0, %v2748_v57 }
 0x2ed   : > { %4419 = vmatpush3.msk.msra.mxu1 %vm335_vm1, %v4916_v18  ;;  %v3589_v58 = vpop.permute.xlu0 %3588 }
 0x2ee   : > { %4428 = vmatprep.subr.msk.mxu1 %vm335_vm1, %v5049_v9  ;;  %v3701_v59 = vsel %vm3700_vm2, %v3684_v17, %v3589_v58  ;;  %3660 = vrot.lane.b32.xlu0 %v3589_v58, %s4623_s20  ;;  %v827_v17 = vpop.f32.mrf.mxu1  ;;  %v5224_v58 = vpop.f32.mrf.mxu0 }
 0x2ef   : > { %v2987_v61 = vpop.trf.xlu1  ;;  %4450 = vmatprep.mubr.msk.f32.mxu0 %vm3717_vm4, %v3701_v59 }
 0x2f0   : > { %4420 = vmatprep.mubr.msk.f32.mxu1 %vm292_vm0, %v2987_v61  ;;  %v4337_v59 = vpop.f32.mrf.mxu1  ;;  %v4357_v61 = vpop.f32.mrf.mxu0 }
 0x2f1   : > { %v3593_v62 = vpop.permute.xlu0 %3592 }
 0x2f2   : > { %3664 = vrot.lane.b32.xlu0 %v3593_v62, %s4623_s20  ;;  %v947_v62 = vpop.f32.mrf.mxu1 }
 0x2f3   : > { %v2988_v45 = vpop.trf.xlu1 }
 0x2f4   : > { %4421 = vmatmul.mubr.msk.f32.vlgmr.msra.gmra.mxu1 %vm292_vm0, %v2988_v45  ;;  %v1422_v45 = vpop.f32.mrf.mxu0 }
 0x2f5   : > { %4429 = vmatpush3.msk.msra.mxu1 %vm335_vm1, %v5049_v9 }
 0x2f7   : > { %v3227_v18 = vpop.trf.xlu1 }
 0x2f8   : > { %4430 = vmatprep.mubr.msk.f32.mxu1 %vm292_vm0, %v3227_v18  ;;  %v4342_v18 = vpop.f32.mrf.mxu1 }
 0x2fb   : > { %v3228_v63 = vpop.trf.xlu1 }
 0x2fc   : > { %4431 = vmatmul.mubr.msk.f32.vlgmr.msra.gmra.mxu1 %vm292_vm0, %v3228_v63 }
 0x2ff   : > { %v3495_v34 = vpop.permute.xlu1 %3494 }
 0x303   : > { %v3501_v0 = vpop.permute.xlu1 %3500 }
 0x307   : > { %v5171_v49 = vpop.permute.xlu1 %3502 }
 0x30b   : > { %v3507_v1 = vpop.permute.xlu1 %3506 }
 0x30f   : > { %v5173_v48 = vpop.permute.xlu1 %3508 }
 0x313   : > { %v3513_v2 = vpop.permute.xlu1 %3512 }
 0x317   : > { %v5175_v3 = vpop.permute.xlu1 %3514 }
 0x31b   : > { %v5177_v4 = vpop.permute.xlu1 %3520 }
 0x31f   : > { %v5179_v5 = vpop.permute.xlu1 %3526 }
 0x323   : > { %v5181_v50 = vpop.permute.xlu1 %3532 }
 0x327   : > { %v3541_v6 = vpop.permute.xlu1 %3540 }
 0x328   : > { %3598 = vrot.lane.b32.xlu1 %v3541_v6, %s4625_s23 }
 0x32b   : > { %v3545_v7 = vpop.permute.xlu1 %3544 }
 0x32c   : > { %3602 = vrot.lane.b32.xlu1 %v3545_v7, %s4625_s23 }
 0x32f   : > { %v3549_v8 = vpop.permute.xlu1 %3548 }
 0x330   : > { %3606 = vrot.lane.b32.xlu1 %v3549_v8, %s4625_s23  ;;  %v3597_v52 = vpop.permute.xlu0 %3596 }
 0x331   : > { %v3686_v9 = vsel %vm1445_vm3, %v3495_v34, %v3597_v52  ;;  %v1067_v34 = vpop.f32.mrf.mxu1 }
 0x333   : > { %v3553_v10 = vpop.permute.xlu1 %3552 }
 0x334   : > { %3610 = vrot.lane.b32.xlu1 %v3553_v10, %s4625_s23  ;;  %v3601_v11 = vpop.permute.xlu0 %3600  ;;  %v1423_v10 = vadd.f32 %v1422_v45, %v587_v53 }
 0x335   : > { %v3688_v12 = vsel %vm1445_vm3, %v3501_v0, %v3601_v11 }
 0x337   : > { %v3557_v13 = vpop.permute.xlu1 %3556 }
 0x338   : > { %3614 = vrot.lane.b32.xlu1 %v3557_v13, %s4625_s23  ;;  %v3605_v19 = vpop.permute.xlu0 %3604 }
 0x339   : > { %v3690_v39 = vsel %vm1445_vm3, %v3507_v1, %v3605_v19  ;;  %v4347_v1 = vpop.f32.mrf.mxu1 }
 0x33b   : > { %v3561_v51 = vpop.permute.xlu1 %3560  ;;  %v1187_v6 = vpop.f32.mrf.mxu1 }
 0x33c   : > { %3618 = vrot.lane.b32.xlu1 %v3561_v51, %s4625_s23  ;;  %v3609_v22 = vpop.permute.xlu0 %3608  ;;  %v1431_v51 = vadd.f32 %v1423_v10, %v707_v38 }
 0x33d   : > { %v5192_v44 = vsel %vm1445_vm3, %v3513_v2, %v3609_v22  ;;  %v4352_v8 = vpop.f32.mrf.mxu1 }
 0x33f   : > { %v3565_v25 = vpop.permute.xlu1 %3564  ;;  %v1307_v11 = vpop.f32.mrf.mxu1 }
 0x340   : > { %3622 = vrot.lane.b32.xlu1 %v3565_v25, %s4625_s23  ;;  %v5195_v14 = vpop.permute.xlu0 %3612  ;;  %v3685_v42 = vsel %vm1445_vm3, %v4990_v60, %v3565_v25  ;;  %v4367_v60 = vpop.f32.mrf.mxu0 }
 0x341   : > { %v4362_v13 = vpop.f32.mrf.mxu1 }
 0x342   : > { %v1713_v63 = vpop.f32.mrf.mxu0 }
 0x343   : > { %v3571_v26 = vpop.permute.xlu1 %3570 }
 0x344   : > { %3642 = vrot.lane.b32.xlu1 %v3571_v26, %s4623_s20  ;;  %v5198_v27 = vpop.permute.xlu0 %3616  ;;  %v1593_v26 = vpop.f32.mrf.mxu1 }
 0x347   : > { %v3575_v28 = vpop.permute.xlu1 %3574 }
 0x348   : > { %3646 = vrot.lane.b32.xlu1 %v3575_v28, %s4623_s20  ;;  %v5201_v15 = vpop.permute.xlu0 %3620 }
 0x34b   : > { %v3579_v30 = vpop.permute.xlu1 %3578 }
 0x34c   : > { %3650 = vrot.lane.b32.xlu1 %v3579_v30, %s4623_s20  ;;  %v3641_v31 = vpop.permute.xlu0 %3640  ;;  %v1433_v30 = vadd.f32 %v1431_v51, %v827_v17 }
 0x34d   : > { %v5205_v32 = vsel %vm3700_vm2, %v3686_v9, %v3641_v31  ;;  %v1428_v9 = vadd.f32 %v4357_v61, %v4322_v29 }
 0x34f   : > { %v3583_v33 = vpop.permute.xlu1 %3582  ;;  %v1432_v19 = vadd.f32 %v4327_v35, %v1428_v9 }
 0x350   : > { %3654 = vrot.lane.b32.xlu1 %v3583_v33, %s4623_s20  ;;  %v3645_v36 = vpop.permute.xlu0 %3644  ;;  %v4372_v33 = vpop.f32.mrf.mxu1 }
 0x351   : > { %v5209_v16 = vsel %vm3700_vm2, %v3688_v12, %v3645_v36  ;;  %v1434_v28 = vadd.f32 %v4332_v47, %v1432_v19 }
 0x353   : > { %v3587_v37 = vpop.permute.xlu1 %3586 }
 0x354   : > { %3658 = vrot.lane.b32.xlu1 %v3587_v37, %s4623_s20  ;;  %v3649_v40 = vpop.permute.xlu0 %3648  ;;  %v1436_v37 = vadd.f32 %v4337_v59, %v1434_v28 }
 0x355   : > { %v3707_v41 = vsel %vm3700_vm2, %v3690_v39, %v3649_v40  ;;  %v1435_v39 = vadd.f32 %v1433_v30, %v947_v62 }
 0x356   : > { %4459 = vmatprep.mubr.msk.f32.mxu1 %vm3717_vm4, %v3707_v41  ;;  %v1833_v41 = vpop.f32.mrf.mxu1  ;;  %v1438_v53 = vadd.f32 %v4342_v18, %v1436_v37 }
 0x357   : > { %v3591_v43 = vpop.permute.xlu1 %3590 }
 0x358   : > { %v5218_v46 = vsel %vm3700_vm2, %v3685_v42, %v3591_v43  ;;  %3662 = vrot.lane.b32.xlu1 %v3591_v43, %s4623_s20  ;;  %v1437_v43 = vadd.f32 %v1435_v39, %v1067_v34  ;;  %v1440_v38 = vadd.f32 %v4347_v1, %v1438_v53 }
 0x35a   : > { %v1439_v45 = vadd.f32 %v1437_v43, %v1187_v6  ;;  %v1442_v17 = vadd.f32 %v4352_v8, %v1440_v38 }
 0x35b   : > { %v3595_v57 = vpop.permute.xlu1 %3594 }
 0x35c   : > { %3666 = vrot.lane.b32.xlu1 %v3595_v57, %s4623_s20  ;;  %v1444_v51 = vmul.f32 0.03125, %v1442_v17 }
 0x35e   : > { %v1447_v1 = vsel %vm1445_vm3, %v1444_v51, -inf }
 0x36c   : > { %v4377_v0 = vpop.f32.mrf.mxu0 }
 0x36e   : > { %v1953_v2 = vpop.f32.mrf.mxu0 }
 0x370   : > { %v4387_v7 = vpop.f32.mrf.mxu0 }
 0x372   : > { %v2193_v52 = vpop.f32.mrf.mxu0 }
 0x374   : > { %v4397_v12 = vpop.f32.mrf.mxu0 }
 0x375   : > { %v2434_v25 = vadd.f32 %v4397_v12, %v4362_v13  ;;  %v1441_v12 = vadd.f32 %v1439_v45, %v1307_v11 }
 0x376   : > { %v2428_v22 = vpop.f32.mrf.mxu0 }
 0x377   : > { %v2429_v31 = vadd.f32 %v2428_v22, %v1593_v26  ;;  %v2438_v36 = vadd.f32 %v4367_v60, %v2434_v25  ;;  %v1443_v22 = vmul.f32 0.03125, %v1441_v12 }
 0x379   : > { %v2437_v40 = vadd.f32 %v2429_v31, %v1713_v63  ;;  %v2440_v42 = vadd.f32 %v4372_v33, %v2438_v36 }
 0x37b   : > { %v2439_v57 = vadd.f32 %v2437_v40, %v1833_v41  ;;  %v2442_v61 = vadd.f32 %v4377_v0, %v2440_v42 }
 0x37c   : > { %v4407_v60 = vpop.f32.mrf.mxu0 }
 0x37d   : > { %v2441_v10 = vadd.f32 %v2439_v57, %v1953_v2  ;;  %v1446_v2 = vsel %vm1445_vm3, %v1443_v22, -inf }
 0x37e   : > { %v2719_v25 = vpop.f32.mrf.mxu0  ;;  %v1448_v11 = vmax.f32 %v1446_v2, %v1447_v1 }
 0x380   : > { %v1449_v31 = vrot.slane %v1448_v11, 4 }
 0x382   : > { %v1450_v37 = vmax.f32 %v1448_v11, %v1449_v31 }
 0x384   : > { %v4382_v29 = vpop.f32.mrf.mxu1  ;;  %v1451_v42 = vrot.slane %v1450_v37, 2 }
 0x385   : > { %v2444_v9 = vadd.f32 %v4382_v29, %v2442_v61 }
 0x386   : > { %v2073_v35 = vpop.f32.mrf.mxu1  ;;  %v1452_v38 = vmax.f32 %v1450_v37, %v1451_v42 }
 0x387   : > { %v2443_v47 = vadd.f32 %v2441_v10, %v2073_v35  ;;  %v2446_v13 = vadd.f32 %v4387_v7, %v2444_v9 }
 0x388   : > { %v1453_v12 = vrot.slane %v1452_v38, 1 }
 0x389   : > { %v2445_v63 = vadd.f32 %v2443_v47, %v2193_v52 }
 0x38c   : > { %v4417_v26 = vpop.f32.mrf.mxu0 }
 0x38e   : > { %v2959_v28 = vpop.f32.mrf.mxu0 }
 0x394   : > { %v4392_v59 = vpop.f32.mrf.mxu1 }
 0x395   : > { %v2448_v62 = vadd.f32 %v4392_v59, %v2446_v13 }
 0x396   : > { %v2313_v19 = vpop.f32.mrf.mxu1 }
 0x397   : > { %v2450_v18 = vmul.f32 0.03125, %v2448_v62  ;;  %v2447_v34 = vadd.f32 %v2445_v63, %v2313_v19  ;;  %v1454_v19 = vmax.f32 %v1452_v38, %v1453_v12 }
 0x399   : > { %v2449_v0 = vmul.f32 0.03125, %v2447_v34  ;;  %v2452_v6 = vsel %vm1445_vm3, %v2450_v18, -inf  ;;  %v1455_v11 = vsub.f32 %v1443_v22, %v1454_v19  ;;  %v1456_v31 = vsub.f32 %v1444_v51, %v1454_v19 }
 0x39b   : > { %v2451_v7 = vsel %vm1445_vm3, %v2449_v0, -inf  ;;  %v1459_v42 = vmul.f32 1.442695, %v1456_v31 }
 0x39c   : > { %v2453_v8 = vmax.f32 %v2451_v7, %v2452_v6  ;;  %v4427_v30 = vpop.f32.mrf.mxu0 }
 0x39e   : > { %v2454_v52 = vrot.slane %v2453_v8, 4  ;;  %v3199_v36 = vpop.f32.mrf.mxu0 }
 0x3a0   : > { %v2455_v33 = vmax.f32 %v2453_v8, %v2454_v52  ;;  %v4437_v41 = vpop.f32.mrf.mxu0 }
 0x3a2   : > { %v2456_v39 = vrot.slane %v2455_v33, 2  ;;  %v3434_v43 = vpop.f32.mrf.mxu0 }
 0x3a4   : > { %v4402_v40 = vpop.f32.mrf.mxu1  ;;  %v2457_v29 = vmax.f32 %v2455_v33, %v2456_v39 }
 0x3a5   : > { %v3440_v57 = vadd.f32 %v4437_v41, %v4402_v40  ;;  %v1457_v40 = vmul.f32 1.442695, %v1455_v11 }
 0x3a6   : > { %v2599_v53 = vpop.f32.mrf.mxu1  ;;  %v2458_v45 = vrot.slane %v2457_v29, 1 }
 0x3a7   : > { %v3435_v35 = vadd.f32 %v3434_v43, %v2599_v53  ;;  %v3444_v9 = vadd.f32 %v4407_v60, %v3440_v57 }
 0x3a8   : > { %v2459_v13 = vmax.f32 %v2457_v29, %v2458_v45 }
 0x3a9   : > { %v3443_v17 = vadd.f32 %v3435_v35, %v2719_v25 }
 0x3aa   : > { %v2460_v34 = vsub.f32 %v2449_v0, %v2459_v13  ;;  %v2461_v2 = vsub.f32 %v2450_v18, %v2459_v13 }
 0x3ac   : > { %v4412_v61 = vpop.f32.mrf.mxu1  ;;  %v2462_v52 = vmul.f32 1.442695, %v2460_v34  ;;  %v2464_v33 = vmul.f32 1.442695, %v2461_v2 }
 0x3ad   : > { %v3446_v47 = vadd.f32 %v4412_v61, %v3444_v9 }
 0x3ae   : > { %v2839_v10 = vpop.f32.mrf.mxu1  ;;  %4538 = vpow2.f32 %v2462_v52 }
 0x3af   : > { %v3445_v59 = vadd.f32 %v3443_v17, %v2839_v10  ;;  %v3448_v63 = vadd.f32 %v4417_v26, %v3446_v47  ;;  %4540 = vpow2.f32 %v2464_v33 }
 0x3b0   : > { %4542 = vpow2.f32 %v1457_v40 }
 0x3b1   : > { %v3447_v7 = vadd.f32 %v3445_v59, %v2959_v28  ;;  %4544 = vpow2.f32 %v1459_v42 }
 0x3b4   : > { %v4422_v62 = vpop.f32.mrf.mxu1 }
 0x3b5   : > { %v3450_v6 = vadd.f32 %v4422_v62, %v3448_v63 }
 0x3b6   : > { %v3079_v1 = vpop.f32.mrf.mxu1 }
 0x3b7   : > { %v3449_v8 = vadd.f32 %v3447_v7, %v3079_v1  ;;  %v3452_v60 = vadd.f32 %v4427_v30, %v3450_v6  ;;  %v5248_v1 = vpop.permute.xlu1 %3598 }
 0x3b9   : > { %v3451_v25 = vadd.f32 %v3449_v8, %v3199_v36 }
 0x3bb   : > { %v5232_v43 = vpop.eup %4538  ;;  %v5250_v7 = vpop.permute.xlu1 %3602 }
 0x3bc   : > { %v4432_v37 = vpop.f32.mrf.mxu1  ;;  %v5234_v36 = vpop.eup %4540  ;;  %v2466_v38 = vsel %vm1445_vm3, %v5232_v43, 0.0 }
 0x3bd   : > { %v3454_v39 = vadd.f32 %v4432_v37, %v3452_v60  ;;  %v5236_v35 = vpop.eup %4542  ;;  %v2467_v45 = vsel %vm1445_vm3, %v5234_v36, 0.0 }
 0x3be   : > { %v3319_v41 = vpop.f32.mrf.mxu1  ;;  %v5242_v9 = vpop.eup %4544  ;;  %v2468_v47 = vadd.f32 %v2467_v45, %v2466_v38  ;;  %v1461_v13 = vsel %vm1445_vm3, %v5236_v35, 0.0 }
 0x3bf   : > { %v3456_v26 = vmul.f32 0.03125, %v3454_v39  ;;  %v3453_v0 = vadd.f32 %v3451_v25, %v3319_v41  ;;  %v1462_v59 = vsel %vm1445_vm3, %v5242_v9, 0.0  ;;  %v5252_v52 = vpop.permute.xlu1 %3606 }
 0x3c0   : > { %v1463_v19 = vadd.f32 %v1462_v59, %v1461_v13  ;;  %v2469_v34 = vrot.slane %v2468_v47, 4 }
 0x3c1   : > { %v3455_v29 = vmul.f32 0.03125, %v3453_v0  ;;  %v3458_v18 = vsel %vm1445_vm3, %v3456_v26, -inf }
 0x3c2   : > { %v1464_v2 = vrot.slane %v1463_v19, 4  ;;  %v2470_v6 = vadd.f32 %v2469_v34, %v2468_v47 }
 0x3c3   : > { %v3457_v22 = vsel %vm1445_vm3, %v3455_v29, -inf }
 0x3c4   : > { %v3459_v51 = vmax.f32 %v3457_v22, %v3458_v18  ;;  %v2471_v8 = vrot.slane %v2470_v6, 2  ;;  %v1465_v11 = vadd.f32 %v1464_v2, %v1463_v19 }
 0x3c6   : > { %v3460_v28 = vrot.slane %v3459_v51, 4  ;;  %v2472_v31 = vadd.f32 %v2471_v8, %v2470_v6  ;;  %v1466_v33 = vrot.slane %v1465_v11, 2 }
 0x3c8   : > { %v3461_v30 = vmax.f32 %v3459_v51, %v3460_v28  ;;  %v2473_v41 = vrot.slane %v2472_v31, 1  ;;  %v1467_v42 = vadd.f32 %v1466_v33, %v1465_v11  ;;  %v4163_v11 = vld [vmem:[%s5429_s1 + $0x28] sm:$0xff] }
 0x3ca   : > { %v3462_v53 = vrot.slane %v3461_v30, 2  ;;  %v2474_v18 = vadd.f32 %v2473_v41, %v2472_v31  ;;  %v1468_v22 = vrot.slane %v1467_v42, 1 }
 0x3cc   : > { %v3463_v57 = vmax.f32 %v3461_v30, %v3462_v53  ;;  %v1469_v53 = vadd.f32 %v1468_v22, %v1467_v42  ;;  %v4137_v42 = vld [vmem:[%s5429_s1 + $0x18] sm:$0xff]  ;;  %v3653_v22 = vpop.permute.xlu0 %3652 }
 0x3ce   : > { %v3464_v61 = vrot.slane %v3463_v57, 1 }
 0x3d0   : > { %v3465_v10 = vmax.f32 %v3463_v57, %v3464_v61 }
 0x3d2   : > { %v3466_v17 = vsub.f32 %v3455_v29, %v3465_v10  ;;  %v3467_v12 = vsub.f32 %v3456_v26, %v3465_v10  ;;  %v5256_v26 = vpop.permute.xlu1 %3610 }
 0x3d4   : > { %v3468_v62 = vmul.f32 1.442695, %v3466_v17  ;;  %v3470_v63 = vmul.f32 1.442695, %v3467_v12 }
 0x3d6   : > { %4546 = vpow2.f32 %v3468_v62  ;;  %v5258_v28 = vpop.permute.xlu1 %3614 }
 0x3d7   : > { %4548 = vpow2.f32 %v3470_v63 }
 0x3d8   : > { %4550 = vrcp.f32 %v2474_v18 }
 0x3d9   : > { %4552 = vrcp.f32 %v1469_v53 }
 0x3da   : > { %v5260_v38 = vpop.permute.xlu1 %3618 }
 0x3de   : > { %v5262_v45 = vpop.permute.xlu1 %3622 }
 0x3e2   : > { %v5264_v12 = vpop.permute.xlu1 %3642 }
 0x3e3   : > { %v4547_v60 = vpop.eup %4546 }
 0x3e4   : > { %v4549_v37 = vpop.eup %4548  ;;  %v3472_v39 = vsel %vm1445_vm3, %v4547_v60, 0.0 }
 0x3e5   : > { %v3473_v25 = vsel %vm1445_vm3, %v4549_v37, 0.0  ;;  %v4551_v10 = vpop.eup %4550 }
 0x3e6   : > { %v3474_v40 = vadd.f32 %v3473_v25, %v3472_v39  ;;  %v2476_v47 = vmul.f32 %v4551_v10, %v2474_v18  ;;  %v4553_v17 = vpop.eup %4552  ;;  %v5266_v34 = vpop.permute.xlu1 %3646  ;;  %v4162_v39 = vld [vmem:[%s5429_s1 + $0x20] sm:$0xff] }
 0x3e7   : > { %v1471_v63 = vmul.f32 %v4553_v17, %v1469_v53  ;;  %v1476_v53 = vld [vmem:[%s5429_s1] sm:$0xff] }
 0x3e8   : > { %v3475_v0 = vrot.slane %v3474_v40, 4  ;;  %v2477_v62 = vsub.f32 2.0, %v2476_v47 }
 0x3e9   : > { %v1472_v8 = vsub.f32 2.0, %v1471_v63 }
 0x3ea   : > { %v3476_v29 = vadd.f32 %v3475_v0, %v3474_v40  ;;  %v2478_v6 = vmul.f32 %v4551_v10, %v2477_v62  ;;  %v3651_v0 = vpop.permute.xlu1 %3650  ;;  %v3657_v10 = vpop.permute.xlu0 %3656 }
 0x3eb   : > { %v1473_v41 = vmul.f32 %v4553_v17, %v1472_v8  ;;  %v3709_v17 = vsel %vm3700_vm2, %v5192_v44, %v3653_v22  ;;  %v3694_v44 = vsel %vm1445_vm3, %v5077_v21, %v5195_v14  ;;  %v3695_v21 = vsel %vm1445_vm3, %v5177_v4, %v5258_v28 }
 0x3ec   : > { %v3477_v51 = vrot.slane %v3476_v29, 2  ;;  %v2480_v40 = vmul.f32 %v5234_v36, %v2478_v6  ;;  %v2479_v18 = vmul.f32 %v5232_v43, %v2478_v6  ;;  %v3711_v62 = vsel %vm3700_vm2, %v3694_v44, %v3657_v10 }
 0x3ed   : > { %v3696_v14 = vsel %vm1445_vm3, %v5085_v23, %v5198_v27  ;;  %v3697_v4 = vsel %vm1445_vm3, %v5179_v5, %v5260_v38  ;;  %v3698_v23 = vsel %vm1445_vm3, %v5091_v24, %v5201_v15 }
 0x3ee   : > { %v3478_v30 = vadd.f32 %v3477_v51, %v3476_v29  ;;  %v2485_v36 = vadd.f32 %v4137_v42, %v2480_v40  ;;  %v1477_v51 = vld [vmem:[%s5429_s1 + $0x8] sm:$0xff] }
 0x3f0   : > { %v3479_v57 = vrot.slane %v3478_v30, 1 }
 0x3f2   : > { %v3480_v61 = vadd.f32 %v3479_v57, %v3478_v30  ;;  %v1474_v30 = vmul.f32 %v5236_v35, %v1473_v41  ;;  %v3655_v57 = vpop.permute.xlu1 %3654  ;;  %v3691_v35 = vsel %vm1445_vm3, %v5173_v48, %v5252_v52  ;;  %v3687_v48 = vsel %vm1445_vm3, %v5067_v20, %v5248_v1 }
 0x3f3   : > { %v3708_v47 = vsel %vm3700_vm2, %v3691_v35, %v3651_v0  ;;  %v3693_v52 = vsel %vm1445_vm3, %v5175_v3, %v5256_v26  ;;  %v3689_v20 = vsel %vm1445_vm3, %v5171_v49, %v5250_v7 }
 0x3f4   : > { %4554 = vrcp.f32 %v3480_v61  ;;  %v3706_v1 = vsel %vm3700_vm2, %v3689_v20, %v5266_v34 }
 0x401   : > { %v4555_v13 = vpop.eup %4554 }
 0x402   : > { %v3482_v59 = vmul.f32 %v4555_v13, %v3480_v61  ;;  %v1478_v61 = vadd.f32 %v1476_v53, %v1474_v30 }
 0x404   : > { %v3483_v19 = vsub.f32 2.0, %v3482_v59  ;;  %v3704_v59 = vsel %vm3700_vm2, %v3687_v48, %v5264_v12  ;;  %v3699_v12 = vsel %vm1445_vm3, %v5181_v50, %v5262_v45 }
 0x406   : > { %v3484_v2 = vmul.f32 %v4555_v13, %v3483_v19  ;;  %v3659_v13 = vpop.permute.xlu1 %3658 }
 0x408   : > { %v3486_v31 = vmul.f32 %v4549_v37, %v3484_v2  ;;  %v3485_v33 = vmul.f32 %v4547_v60, %v3484_v2  ;;  %v4136_v60 = vld [vmem:[%s5429_s1 + $0x10] sm:$0xff]  ;;  %v1475_v37 = vmul.f32 %v5242_v9, %v1473_v41 }
 0x409   : > { %v2484_v43 = vadd.f32 %v4136_v60, %v2479_v18 }
 0x40a   : > { %v3491_v25 = vadd.f32 %v4163_v11, %v3486_v31  ;;  %v3490_v29 = vadd.f32 %v4162_v39, %v3485_v33  ;;  %v1479_v9 = vadd.f32 %v1477_v51, %v1475_v37  ;;  %v3663_v3 = vpop.permute.xlu1 %3662 }
 0x40b   : > { %v3714_v27 = vsel %vm3700_vm2, %v3697_v4, %v3663_v3 }
 0x40c   : > { %4438 = vmatprep.subr.mxu0 %v3491_v25  ;;  %4474 = vmatprep.subr.mxu1 %v3491_v25 }
 0x40d   : > { %4439 = vmatpush3.msra.mxu0 %v3491_v25  ;;  %4480 = vmatpush3.msra.mxu1 %v3491_v25 }
 0x40e   : > { %4440 = vmatprep.subr.mxu0 %v3490_v29  ;;  %4475 = vmatprep.subr.mxu1 %v3490_v29  ;;  %v3667_v28 = vpop.permute.xlu1 %3666 }
 0x40f   : > { %4441 = vmatpush3.msra.mxu0 %v3490_v29  ;;  %4481 = vmatpush3.msra.mxu1 %v3490_v29  ;;  %v3716_v63 = vsel %vm3700_vm2, %v3699_v12, %v3667_v28 }
 0x410   : > { %4442 = vmatprep.subr.mxu0 %v2485_v36  ;;  %4476 = vmatprep.subr.mxu1 %v2485_v36 }
 0x411   : > { %4443 = vmatpush3.msra.mxu0 %v2485_v36  ;;  %4482 = vmatpush3.msra.mxu1 %v2485_v36 }
 0x412   : > { %4444 = vmatprep.subr.mxu0 %v2484_v43  ;;  %4477 = vmatprep.subr.mxu1 %v2484_v43 }
 0x413   : > { %4445 = vmatpush3.msra.mxu0 %v2484_v43  ;;  %4483 = vmatpush3.msra.mxu1 %v2484_v43 }
 0x414   : > { %4446 = vmatprep.subr.mxu0 %v1479_v9  ;;  %4478 = vmatprep.subr.mxu1 %v1479_v9 }
 0x415   : > { %4447 = vmatpush3.msra.mxu0 %v1479_v9  ;;  %4484 = vmatpush3.msra.mxu1 %v1479_v9 }
 0x416   : > { %4448 = vmatprep.subr.mxu0 %v1478_v61  ;;  %4479 = vmatprep.subr.mxu1 %v1478_v61 }
 0x417   : > { %4449 = vmatpush3.msra.mxu0 %v1478_v61  ;;  %4485 = vmatpush3.msra.mxu1 %v1478_v61 }
 0x418   : > { %4451 = vmatmul.mubr.msk.f32.vlgmr.msra.gmra.mxu0 %vm3717_vm4, %v5218_v46  ;;  %4460 = vmatmul.mubr.msk.f32.vlgmr.msra.gmra.mxu1 %vm3717_vm4, %v3708_v47  ;;  %v3661_v46 = vpop.permute.xlu0 %3660 }
 0x419   : > { %4453 = vmatprep.mubr.msk.f32.mxu0 %vm3717_vm4, %v5205_v32  ;;  %4462 = vmatprep.mubr.msk.f32.mxu1 %vm3717_vm4, %v3709_v17  ;;  %v3710_v32 = vsel %vm3700_vm2, %v3693_v52, %v3655_v57  ;;  %v3713_v26 = vsel %vm3700_vm2, %v3696_v14, %v3661_v46 }
 0x41c   : > { %4454 = vmatmul.mubr.msk.f32.gmra.mxu0 %vm3717_vm4, %v3704_v59  ;;  %4463 = vmatmul.mubr.msk.f32.gmra.mxu1 %vm3717_vm4, %v3710_v32  ;;  %v3665_v49 = vpop.permute.xlu0 %3664  ;;  %v466_v59 = vadd.f32 %v5224_v58, %v4878_v54 }
 0x41d   : > { %4456 = vmatprep.mubr.msk.f32.mxu0 %vm3717_vm4, %v5209_v16  ;;  %4465 = vmatprep.mubr.msk.f32.mxu1 %vm3717_vm4, %v3711_v62  ;;  %v3712_v16 = vsel %vm3700_vm2, %v3695_v21, %v3659_v13  ;;  %v3715_v7 = vsel %vm3700_vm2, %v3698_v23, %v3665_v49  ;;  %v471_v13 = vadd.f32 %v5221_v55, %v4880_v56 }
 0x420   : > { %4457 = vmatmul.mubr.msk.f32.gmra.mxu0 %vm3717_vm4, %v3706_v1  ;;  %4466 = vmatmul.mubr.msk.f32.gmra.mxu1 %vm3717_vm4, %v3712_v16 }
 0x421   : > { %4468 = vmatprep.mubr.msk.f32.mxu1 %vm3717_vm4, %v3713_v26 }
 0x424   : > { %4469 = vmatmul.mubr.msk.f32.gmra.mxu1 %vm3717_vm4, %v3714_v27 }
 0x425   : > { %4471 = vmatprep.mubr.msk.f32.mxu1 %vm3717_vm4, %v3715_v7 }
 0x428   : > { %4472 = vmatmul.mubr.msk.f32.gmra.mxu1 %vm3717_vm4, %v3716_v63 }
 0x4d8   : > { %v4452_v5 = vpop.f32.mrf.mxu0  ;;  %v4461_v38 = vpop.f32.mrf.mxu1 }
 0x4d9   : > { %3931 = vrot.lane.b32.xlu1 %v4461_v38, %s4624_s22 }
 0x4da   : > { %v3832_v24 = vpop.f32.mrf.mxu0  ;;  %v3862_v15 = vpop.f32.mrf.mxu1 }
 0x4db   : > { %3929 = vrot.lane.b32.xlu0 %v3862_v15, %s4624_s22 }
 0x4dc   : > { %v4455_v19 = vpop.f32.mrf.mxu0  ;;  %v4464_v34 = vpop.f32.mrf.mxu1 }
 0x4dd   : > { %3915 = vrot.lane.b32.xlu1 %v4455_v19, %s4625_s23 }
 0x4de   : > { %v3842_v2 = vpop.f32.mrf.mxu0  ;;  %v3872_v6 = vpop.f32.mrf.mxu1 }
 0x4df   : > { %3913 = vrot.lane.b32.xlu0 %v3842_v2, %s4625_s23 }
 0x4e0   : > { %v4467_v50 = vpop.f32.mrf.mxu1  ;;  %v4458_v45 = vpop.f32.mrf.mxu0 }
 0x4e1   : > { %3939 = vrot.lane.b32.xlu1 %v4464_v34, %s4621_s13 }
 0x4e2   : > { %v3882_v8 = vpop.f32.mrf.mxu1  ;;  %v3852_v11 = vpop.f32.mrf.mxu0 }
 0x4e3   : > { %3937 = vrot.lane.b32.xlu0 %v3872_v6, %s4621_s13 }
 0x4e4   : > { %v4470_v31 = vpop.f32.mrf.mxu1 }
 0x4e5   : > { %3923 = vrot.lane.b32.xlu1 %v4458_v45, %s4623_s20 }
 0x4e6   : > { %v3892_v33 = vpop.f32.mrf.mxu1 }
 0x4e7   : > { %3921 = vrot.lane.b32.xlu0 %v3852_v11, %s4623_s20  ;;  %s4185_s20 = sshll.u32 %s4675_s19, 8 }
 0x4e8   : > { %v4473_v39 = vpop.f32.mrf.mxu1  ;;  %s5384_s29 = scalar_lea.hbm %s5432_s4, %s4185_s20 }
 0x4e9   : > { %3947 = vrot.lane.b32.xlu1 %v4467_v50, %s4622_s14 }
 0x4ea   : > { %v3902_v25 = vpop.f32.mrf.mxu1 }
 0x4eb   : > { %3945 = vrot.lane.b32.xlu0 %v3882_v8, %s4622_s14 }
 0x4ed   : > { %3955 = vrot.lane.b32.xlu1 %v4470_v31, %s4620_s12 }
 0x4ef   : > { %3953 = vrot.lane.b32.xlu0 %v3892_v33, %s4620_s12 }
 0x4f1   : > { %3963 = vrot.lane.b32.xlu1 %v4473_v39, %s4619_s11 }
 0x4f3   : > { %3961 = vrot.lane.b32.xlu0 %v3902_v25, %s4619_s11  ;;  %s186_s11 = sand.u32 1, %s4608_s16  }
 0x4f4   : > { %s4071_s12 = sshll.u32 %s186_s11, 4  ;;  %s5388_s30 = scalar_lea.sflag [#allocation3], %s186_s11 }
 0x4f5   : > { %s188_s13 = scalar_lea.vmem [#allocation2], %s4071_s12 }
 0x4f6   : > { %s4005_s14 = sshll.u32 %s188_s13, 4  ;;  %s5379_s14 = int_to_ptr.vmem [resolvable:$true] %s4005_s14 }
 0x4f7   : > { %s4556_s19 = scalar_lea.vmem %s5379_s14, 256  ;;  %p4563_p0 = scmp.lt.s32.totalorder %s5379_s14, %s4561_s6 }
 0x4f8   : > { %p4557_p11 = scmp.ne.s32.totalorder %s5379_s14, %s4556_s19  ;;  %p4564_p1 = scmp.lt.s32.totalorder %s4562_s7, %s4556_s19 }
 0x4fa   : > { %p4558_p12 = pnand %p4557_p11, %p4692_p5  ;;  %p4565_p2 = por %p4564_p1, %p4563_p0 }
 0x4fc   : > { %p4559_p13 = pneg %p4558_p12 }
 0x4fe   : > { %p4566_p3 = pnand %p4565_p2, %p4559_p13 }
 0x54b   : > { %v3932_v40 = vpop.permute.xlu1 %3931 }
 0x54d   : > { %v3930_v41 = vpop.permute.xlu0 %3929 }
 0x54f   : > { %v3916_v42 = vpop.permute.xlu1 %3915 }
 0x550   : > { %v3968_v36 = vsel %vm1445_vm3, %v4452_v5, %v3916_v42 }
 0x551   : > { %v3914_v0 = vpop.permute.xlu0 %3913 }
 0x552   : > { %v3967_v51 = vsel %vm1445_vm3, %v3832_v24, %v3914_v0 }
 0x553   : > { %v3940_v29 = vpop.permute.xlu1 %3939 }
 0x555   : > { %v3938_v18 = vpop.permute.xlu0 %3937 }
 0x557   : > { %v3924_v60 = vpop.permute.xlu1 %3923 }
 0x558   : > { %v3970_v37 = vsel %vm3700_vm2, %v3968_v36, %v3924_v60 }
 0x559   : > { %v3922_v22 = vpop.permute.xlu0 %3921  ;;  %v3972_v53 = vsel %vm3717_vm4, %v3970_v37, %v3932_v40 }
 0x55a   : > { %v3969_v43 = vsel %vm3700_vm2, %v3967_v51, %v3922_v22  ;;  %v3975_v61 = vsel %vm3973_vm5, %v3972_v53, %v3940_v29 }
 0x55b   : > { %v3948_v30 = vpop.permute.xlu1 %3947  ;;  %v3971_v9 = vsel %vm3717_vm4, %v3969_v43, %v3930_v41 }
 0x55c   : > { %v3974_v35 = vsel %vm3973_vm5, %v3971_v9, %v3938_v18  ;;  %v3978_v17 = vsel %vm3976_vm6, %v3975_v61, %v3948_v30 }
 0x55d   : > { %v3946_v57 = vpop.permute.xlu0 %3945 }
 0x55e   : > { %v3977_v44 = vsel %vm3976_vm6, %v3974_v35, %v3946_v57 }
 0x55f   : > { %v3956_v10 = vpop.permute.xlu1 %3955 }
 0x560   : > { %v3981_v48 = vsel %vm3979_vm7, %v3978_v17, %v3956_v10 }
 0x561   : > { %v3954_v47 = vpop.permute.xlu0 %3953 }
 0x562   : > { %v3980_v32 = vsel %vm3979_vm7, %v3977_v44, %v3954_v47 }
 0x563   : > { %v3964_v52 = vpop.permute.xlu1 %3963 }
 0x564   : > { %v3984_v46 = vsel %vm3982_vm8, %v3981_v48, %v3964_v52 }
 0x565   : > { %v3986_v62 = vadd.f32 %v3984_v46, %v471_v13  ;;  %v3962_v20 = vpop.permute.xlu0 %3961 }
 0x566   : > { %v3983_v21 = vsel %vm3982_vm8, %v3980_v32, %v3962_v20 }
 0x567   : > { %v3988_v3 = vmax.f32 %v3986_v62, 0.0  ;;  %v3985_v14 = vadd.f32 %v3983_v21, %v466_v59 }
 0x569   : > { %3990 = vst [vmem:[%s188_s13 + $0x8] sm:$0xff] %v3988_v3  ;;  %v3987_v54 = vmax.f32 %v3985_v14, 0.0 }
 0x56b   : > { %3989 = vst [vmem:[%s188_s13] sm:$0xff] %v3987_v54 }
 0x56c   : > { %4569 = shalt.err (!%p4566_p3)
}
 0x56d   : > { %s4570_s8 = scalar_lea.hbm %s5384_s29, 256  ;;  %s4574_s27 = scalar_lea.hbm %s5432_s4, 512 }
 0x56e   : > { %p4571_p4 = scmp.ne.s32.totalorder %s5384_s29, %s4570_s8  ;;  %p4575_p9 = scmp.lt.s32.totalorder %s5384_s29, %s5432_s4 }
 0x56f   : > { %p4576_p10 = scmp.lt.s32.totalorder %s4574_s27, %s4570_s8 }
 0x570   : > { %p4572_p7 = pnand %p4571_p4, %p4692_p5 }
 0x571   : > { %p4577_p11 = por %p4576_p10, %p4575_p9 }
 0x572   : > { %p4573_p8 = pneg %p4572_p7 }
 0x574   : > { %p4578_p12 = pnand %p4577_p11, %p4573_p8 }
 0x576   : > { %4581 = shalt.err (!%p4578_p12)
}
 0x577   : > { %s4627_s12 = smov 128   ;;  %s4628_s13 = smov 8  }
 0x578   : > { %4486 = dma.vmem_to_hbm [thread:$0]  (%p4692_p5), %s5379_s14, 256, %s5384_s29, %s5388_s30, %s4627_s12, %s4627_s12, %s4628_s13  }
 0x579 PF: > { %p4492_p13 = scmp.ge.s32.totalorder %s4616_s18, 2  ;;  %s4020_s20 = sand.u32 1, %s4604_s15  }
 0x57a   : > { %s4021_s22 = scalar_lea.sflag [#allocation3], %s4020_s20 }
 0x57b   : > { %p4489_p0 = pnand %p4492_p13, %p4696_p6 }
 0x57d   : > { %p4490_p1 = pneg %p4489_p0 }
 0x57f   : > { %4599 = dma.done.wait (%p4490_p1), %s4021_s22, 256  }
 0x580   : > { %4601 = vsyncadd (%p4490_p1), %s4021_s22, 4294967040  ;;  %p14_p2 = scmp.ge.s32.totalorder %s4679_s21, 4   ;;  %s5435_s15 = smov %s4608_s16 }
 0x581   : > { %s5436_s16 = smov %s4612_s17  ;;  %s5437_s17 = smov %s4690_s24 }
 0x582   : > { %s5438_s18 = smov %s4679_s21  ;;  %16 = sbr.rel (!%p14_p2) target bundleno = 3 (0x3), region = 73 }
 0x587   :  { %4026 = vsyncpa [#allocation3], 1 }
 0x588   :  { %4028 = vsyncpa [#allocation3 + $0x1], 1 }

</bundles_post_ra>
